<compile_context>
chip_gen: v7x
topology: tpu7x:2x2x1
jax: 0.10.0
libtpu: 0.0.40
codegen_flags: <defaults>
</compile_context>

<pallas_src>
import functools
import math
from typing import NamedTuple

import jax
import jax.numpy as jnp
from jax import lax
from jax.experimental import pallas as pl
from jax.experimental.pallas import tpu as pltpu


class Config(NamedTuple):
    vocab: int = 64
    d_model: int = 128
    n_head: int = 4
    d_head: int = 32
    d_inner: int = 256
    n_layer: int = 2
    layer_norm_eps: float = 1e-12


NEG_INF = -1e30


# ----------------------------------------------------------------------------
# In-kernel helpers (f32 element-wise math; bf16 only at MXU inputs)
# ----------------------------------------------------------------------------

def _erf(x):
    # Abramowitz & Stegun 7.1.26 polynomial approximation (|err| < 1.5e-7).
    # XLNet uses the exact (erf) GELU; this stays on ops with guaranteed
    # Mosaic lowering (exp / abs / where) instead of relying on lax.erf.
    a1, a2, a3, a4, a5 = (0.254829592, -0.284496736, 1.421413741,
                          -1.453152027, 1.061405429)
    p = 0.3275911
    sign = jnp.where(x < 0.0, -1.0, 1.0)
    ax = jnp.abs(x)
    t = 1.0 / (1.0 + p * ax)
    poly = ((((a5 * t + a4) * t + a3) * t + a2) * t + a1) * t
    return sign * (1.0 - poly * jnp.exp(-ax * ax))


def _gelu_exact(x):
    return x * 0.5 * (1.0 + _erf(x * (1.0 / math.sqrt(2.0))))


def _layernorm(x, gamma, beta, eps):
    mu = jnp.mean(x, axis=-1, keepdims=True)
    d = x - mu
    var = jnp.mean(d * d, axis=-1, keepdims=True)
    return d * lax.rsqrt(var + eps) * gamma + beta


def _dot_nt(a, b):
    """a[m,d] contracted with b[n,d] -> [m,n] (f32 accum), no explicit .T."""
    return lax.dot_general(a, b, (((1,), (1,)), ((), ())),
                           preferred_element_type=jnp.float32)


# ----------------------------------------------------------------------------
# Fused attention block kernel (per batch element)
# ----------------------------------------------------------------------------

def _attn_block_kernel(x_ref, pos_ref, wqkv_ref, wr_ref,
                       rw_ref, rr_ref, rs_ref, seg_ref,
                       ttr_ref, ttc_ref, am_ref,
                       wo_ref, ln_g_ref, ln_b_ref, o_ref,
                       *, n_head, d_head, eps):
    S, Dm = x_ref.shape
    H, Dh = n_head, d_head
    HD = H * Dh
    scale = 1.0 / math.sqrt(Dh)

    x = x_ref[...]                                        # [S, Dm] f32
    xb = x.astype(jnp.bfloat16)

    # Fused Q|K|V projection: one [S, Dm] @ [Dm, 3*HD] MXU pass.
    qkv = jnp.dot(xb, wqkv_ref[...], preferred_element_type=jnp.float32)
    q = qkv[:, 0 * HD:1 * HD]
    k = qkv[:, 1 * HD:2 * HD]
    v = qkv[:, 2 * HD:3 * HD]

    # Relative-position projection r = pos_emb @ Wr  -> [2S, HD].
    r = jnp.dot(pos_ref[...], wr_ref[...], preferred_element_type=jnp.float32)

    q_rw = q + rw_ref[...]                                # content-bias query
    q_rr = q + rr_ref[...]                                # position-bias query
    q_rs = q + rs_ref[...]                                # segment-bias query
    seg_f = seg_ref[...]                                  # [2, HD]

    # Pad-key mask built in kernel from the raw [1, S] attention mask:
    # key j is masked iff it is padding and j != i (XLNet content stream).
    valid = am_ref[...]                                   # [1, S], 1.0 = keep
    i_idx = lax.broadcasted_iota(jnp.int32, (S, S), 0)
    j_idx = lax.broadcasted_iota(jnp.int32, (S, S), 1)
    non_diag = (i_idx != j_idx).astype(jnp.float32)
    mask_bias = NEG_INF * (1.0 - valid) * non_diag        # [S, S]

    # Segment-difference indicator from per-token types ([S,1] vs [1,S]).
    seg_diff = ttc_ref[...] != ttr_ref[...]               # [S, S] bool

    outs = []
    for h in range(H):                                    # H=4, unrolled
        sl = slice(h * Dh, (h + 1) * Dh)
        qw_h = q_rw[:, sl].astype(jnp.bfloat16)
        qr_h = q_rr[:, sl].astype(jnp.bfloat16)
        qs_h = q_rs[:, sl].astype(jnp.bfloat16)
        k_h = k[:, sl].astype(jnp.bfloat16)
        v_h = v[:, sl].astype(jnp.bfloat16)
        r_h = r[:, sl].astype(jnp.bfloat16)
        seg_h = seg_f[:, sl].astype(jnp.bfloat16)

        # content score: (q + r_w_bias) . k
        ac = _dot_nt(qw_h, k_h)                           # [S, S]

        # relative-position score + rel_shift: bd[i, j] = qr_i . r_{S-i+j}
        bd_full = _dot_nt(qr_h, r_h)                      # [S, 2S]
        # TODO(synk): at real XLNet scale (S~512) replace this unrolled
        # static-slice shift with a strided pltpu.roll / reshape trick.
        bd = jnp.concatenate(
            [bd_full[i:i + 1, S - i:2 * S - i] for i in range(S)], axis=0)

        # segment score: per-query same/diff logits selected by seg_diff
        ef_sd = _dot_nt(qs_h, seg_h)                      # [S, 2]
        ef = jnp.where(seg_diff, ef_sd[:, 1:2], ef_sd[:, 0:1])   # [S, S]

        s = (ac + bd + ef) * scale + mask_bias
        m = jnp.max(s, axis=-1, keepdims=True)
        e = jnp.exp(s - m)
        p = e * pl.reciprocal(jnp.sum(e, axis=-1, keepdims=True), approx=True)

        outs.append(jnp.dot(p.astype(jnp.bfloat16), v_h,
                            preferred_element_type=jnp.float32))  # [S, Dh]

    attn_vec = jnp.concatenate(outs, axis=-1)             # [S, HD] lane-dense

    # Output projection + residual + LayerNorm, all still in VMEM.
    proj = jnp.dot(attn_vec.astype(jnp.bfloat16), wo_ref[...],
                   preferred_element_type=jnp.float32)    # [S, Dm]
    y = _layernorm(proj + x, ln_g_ref[...], ln_b_ref[...], eps)
    o_ref[...] = y.astype(o_ref.dtype)


def attn_block(x, pos_emb_bf16, lp, tt_row, tt_col, attn_mask_row, cfg):
    """x: [B, S, Dm] -> LayerNorm(rel_attn(x) + x): [B, S, Dm]."""
    B, S, Dm = x.shape
    H, Dh = cfg.n_head, cfg.d_head
    HD = H * Dh

    wqkv = jnp.concatenate([lp["wq"], lp["wk"], lp["wv"]],
                           axis=1).astype(jnp.bfloat16)           # [Dm, 3*HD]
    wr = lp["wr"].astype(jnp.bfloat16)
    wo = lp["wo"].astype(jnp.bfloat16)
    rw = lp["r_w_bias"].reshape(1, HD)
    rr = lp["r_r_bias"].reshape(1, HD)
    rs = lp["r_s_bias"].reshape(1, HD)
    seg = lp["seg_embed"].reshape(2, HD)
    ln_g = lp["ln1_g"].reshape(1, Dm)
    ln_b = lp["ln1_b"].reshape(1, Dm)

    def _fixed(shape):
        return pl.BlockSpec(shape, lambda b: (0,) * len(shape))

    def _per_b(s0, s1):
        return pl.BlockSpec((None, s0, s1), lambda b: (b, 0, 0))

    return pl.pallas_call(
        functools.partial(_attn_block_kernel, n_head=H, d_head=Dh,
                          eps=cfg.layer_norm_eps),
        out_shape=jax.ShapeDtypeStruct((B, S, Dm), jnp.float32),
        grid=(B,),
        in_specs=[
            _per_b(S, Dm),              # x
            _fixed((2 * S, Dm)),        # pos_emb (bf16)
            _fixed((Dm, 3 * HD)),       # fused Wq|Wk|Wv (bf16)
            _fixed((Dm, HD)),           # Wr (bf16)
            _fixed((1, HD)),            # r_w_bias
            _fixed((1, HD)),            # r_r_bias
            _fixed((1, HD)),            # r_s_bias
            _fixed((2, HD)),            # seg_embed
            _per_b(1, S),               # token types (key layout)
            _per_b(S, 1),               # token types (query layout)
            _per_b(1, S),               # attention mask (1 = keep)
            _fixed((HD, Dm)),           # Wo (bf16)
            _fixed((1, Dm)),            # ln1 gamma
            _fixed((1, Dm)),            # ln1 beta
        ],
        out_specs=_per_b(S, Dm),
        compiler_params=pltpu.CompilerParams(
            dimension_semantics=("parallel",)),
    )(x, pos_emb_bf16, wqkv, wr, rw, rr, rs, seg,
      tt_row, tt_col, attn_mask_row, wo, ln_g, ln_b)


# ----------------------------------------------------------------------------
# Fused FFN + residual + LayerNorm kernel
# ----------------------------------------------------------------------------

def _ffn_ln_kernel(h_ref, w1_ref, b1_ref, w2_ref, b2_ref, g_ref, beta_ref,
                   o_ref, *, eps):
    h = h_ref[...]                                        # [tm, Dm] f32
    a = jnp.dot(h.astype(jnp.bfloat16), w1_ref[...],
                preferred_element_type=jnp.float32) + b1_ref[...]
    a = _gelu_exact(a)                                    # exact erf-GELU
    y = jnp.dot(a.astype(jnp.bfloat16), w2_ref[...],
                preferred_element_type=jnp.float32) + b2_ref[...]
    o_ref[...] = _layernorm(y + h, g_ref[...], beta_ref[...],
                            eps).astype(o_ref.dtype)


def ffn_block(h, lp, cfg, tm=256):
    """h: [M, Dm] -> LayerNorm(ff2(gelu(ff1(h))) + h): [M, Dm]."""
    M, Dm = h.shape
    Di = cfg.d_inner
    tm = min(tm, M)
    assert M % tm == 0

    w1 = lp["ff1_w"].astype(jnp.bfloat16)
    w2 = lp["ff2_w"].astype(jnp.bfloat16)
    b1 = lp["ff1_b"].reshape(1, Di)
    b2 = lp["ff2_b"].reshape(1, Dm)
    g = lp["ln2_g"].reshape(1, Dm)
    beta = lp["ln2_b"].reshape(1, Dm)

    return pl.pallas_call(
        functools.partial(_ffn_ln_kernel, eps=cfg.layer_norm_eps),
        out_shape=jax.ShapeDtypeStruct((M, Dm), jnp.float32),
        grid=(M // tm,),
        in_specs=[
            pl.BlockSpec((tm, Dm), lambda i: (i, 0)),
            pl.BlockSpec((Dm, Di), lambda i: (0, 0)),
            pl.BlockSpec((1, Di), lambda i: (0, 0)),
            pl.BlockSpec((Di, Dm), lambda i: (0, 0)),
            pl.BlockSpec((1, Dm), lambda i: (0, 0)),
            pl.BlockSpec((1, Dm), lambda i: (0, 0)),
            pl.BlockSpec((1, Dm), lambda i: (0, 0)),
        ],
        out_specs=pl.BlockSpec((tm, Dm), lambda i: (i, 0)),
        compiler_params=pltpu.CompilerParams(
            dimension_semantics=("parallel",)),
    )(h, w1, b1, w2, b2, g, beta)


# ----------------------------------------------------------------------------
# Pooling head: mean over seq + Dropout(identity) + Linear(Dm, 1) + Sigmoid
# ----------------------------------------------------------------------------

def _pool_head_kernel(h_ref, w_ref, b_ref, o_ref):
    pooled = jnp.mean(h_ref[...], axis=1)                 # [B, Dm]
    logits = jnp.dot(pooled, w_ref[...],
                     preferred_element_type=jnp.float32) + b_ref[...]
    o_ref[...] = jax.nn.sigmoid(logits).astype(o_ref.dtype)


def pool_head(h, w, b):
    B, S, D = h.shape
    return pl.pallas_call(
        _pool_head_kernel,
        out_shape=jax.ShapeDtypeStruct((B, 1), jnp.float32),
        in_specs=[pl.BlockSpec((B, S, D), lambda: (0, 0, 0)),
                  pl.BlockSpec((D, 1), lambda: (0, 0)),
                  pl.BlockSpec((1, 1), lambda: (0, 0))],
        out_specs=pl.BlockSpec((B, 1), lambda: (0, 0)),
    )(h, w, b)


# ----------------------------------------------------------------------------
# XLNet-style encoder glue (only embedding gather / reshapes stay in XLA)
# ----------------------------------------------------------------------------

def relative_positional_encoding(S, d_model):
    # pos_seq = [S, S-1, ..., -S+1]  (klen = qlen = S, no memory)
    pos_seq = jnp.arange(S, -S, -1, dtype=jnp.float32)            # [2S]
    inv_freq = 1.0 / (10000.0 ** (jnp.arange(0, d_model, 2, dtype=jnp.float32)
                                  / d_model))
    sinusoid = pos_seq[:, None] * inv_freq[None, :]               # [2S, d/2]
    return jnp.concatenate([jnp.sin(sinusoid), jnp.cos(sinusoid)], axis=-1)


def xlnet_class_l1_forward(params, ids, mask, token_type_ids, cfg):
    B, S = ids.shape
    Dm = cfg.d_model

    # word embedding lookup (gather kept in XLA glue)
    h = jnp.take(params["word_emb"], ids, axis=0)                 # [B, S, Dm]

    pos_emb = relative_positional_encoding(S, Dm).astype(jnp.bfloat16)

    ttf = token_type_ids.astype(jnp.float32)
    tt_row = ttf.reshape(B, 1, S)                                 # key layout
    tt_col = ttf.reshape(B, S, 1)                                 # query layout
    attn_mask_row = mask.astype(jnp.float32).reshape(B, 1, S)     # 1 = keep

    for lp in params["layers"]:
        h1 = attn_block(h, pos_emb, lp, tt_row, tt_col, attn_mask_row, cfg)
        h2 = ffn_block(h1.reshape(B * S, Dm), lp, cfg)
        h = h2.reshape(B, S, Dm)

    # pool_hidden_state + dropout(identity) + Linear(d_model, 1) + Sigmoid
    return pool_head(h, params["clf_w"], params["clf_b"])         # [B, 1]


# ----------------------------------------------------------------------------
# Deterministic parameter init (synthetic — no checkpoint loading)
# ----------------------------------------------------------------------------

def init_params(key, cfg):
    keys = iter(jax.random.split(key, 128))

    def nrm(shape):
        return jax.random.normal(next(keys), shape, jnp.float32) * 0.02

    HD = cfg.n_head * cfg.d_head
    params = {
        "word_emb": nrm((cfg.vocab, cfg.d_model)),
        "clf_w": nrm((cfg.d_model, 1)),
        "clf_b": jnp.zeros((1, 1), jnp.float32),
        "layers": [],
    }
    for _ in range(cfg.n_layer):
        params["layers"].append({
            "wq": nrm((cfg.d_model, HD)),
            "wk": nrm((cfg.d_model, HD)),
            "wv": nrm((cfg.d_model, HD)),
            "wr": nrm((cfg.d_model, HD)),
            "wo": nrm((HD, cfg.d_model)),
            "r_w_bias": nrm((cfg.n_head, cfg.d_head)),
            "r_r_bias": nrm((cfg.n_head, cfg.d_head)),
            "r_s_bias": nrm((cfg.n_head, cfg.d_head)),
            "seg_embed": nrm((2, cfg.n_head, cfg.d_head)),
            "ln1_g": jnp.ones((cfg.d_model,), jnp.float32),
            "ln1_b": jnp.zeros((cfg.d_model,), jnp.float32),
            "ff1_w": nrm((cfg.d_model, cfg.d_inner)),
            "ff1_b": jnp.zeros((cfg.d_inner,), jnp.float32),
            "ff2_w": nrm((cfg.d_inner, cfg.d_model)),
            "ff2_b": jnp.zeros((cfg.d_model,), jnp.float32),
            "ln2_g": jnp.ones((cfg.d_model,), jnp.float32),
            "ln2_b": jnp.zeros((cfg.d_model,), jnp.float32),
        })
    return params


if __name__ == "__main__":
    cfg = Config()
    B, S = 2, 8

    key = jax.random.PRNGKey(0)
    k_ids, k_seg, k_par = jax.random.split(key, 3)

    ids = jax.random.randint(k_ids, (B, S), 0, cfg.vocab, dtype=jnp.int32)
    mask = jnp.ones((B, S), jnp.int32).at[1, 6:].set(0)           # some padding
    token_type_ids = jax.random.randint(k_seg, (B, S), 0, 2, dtype=jnp.int32)

    params = init_params(k_par, cfg)

    fwd = jax.jit(functools.partial(xlnet_class_l1_forward, cfg=cfg))
    out = jax.block_until_ready(fwd(params, ids, mask, token_type_ids))

    assert out.shape == (B, 1)
    assert bool(jnp.all(jnp.isfinite(out)))
    assert bool(jnp.all((out >= 0.0) & (out <= 1.0)))
    # TODO(synk): pretrained 'Ibrahim-Alam/finetuning-xlnet-base-cased-...'
    # weights are not loadable here; parameters are synthetic.
    print("KERNEL_OK")
</pallas_src>

<mosaic_0001>
module attributes {stable_mosaic.version = 11 : i64} {
  func.func @_attn_block_kernel(%arg0: i32, %arg1: memref<1x8x128xf32, #tpu.memory_space<vmem>>, %arg2: memref<16x128xbf16, #tpu.memory_space<vmem>>, %arg3: memref<128x384xbf16, #tpu.memory_space<vmem>>, %arg4: memref<128x128xbf16, #tpu.memory_space<vmem>>, %arg5: memref<1x128xf32, #tpu.memory_space<vmem>>, %arg6: memref<1x128xf32, #tpu.memory_space<vmem>>, %arg7: memref<1x128xf32, #tpu.memory_space<vmem>>, %arg8: memref<2x128xf32, #tpu.memory_space<vmem>>, %arg9: memref<1x1x8xf32, #tpu.memory_space<vmem>>, %arg10: memref<1x8x1xf32, #tpu.memory_space<vmem>>, %arg11: memref<1x1x8xf32, #tpu.memory_space<vmem>>, %arg12: memref<128x128xbf16, #tpu.memory_space<vmem>>, %arg13: memref<1x128xf32, #tpu.memory_space<vmem>>, %arg14: memref<1x128xf32, #tpu.memory_space<vmem>>, %arg15: memref<1x8x128xf32, #tpu.memory_space<vmem>>) attributes {dimension_semantics = [#tpu.dimension_semantics<parallel>], iteration_bounds = array<i64: 2>, scalar_prefetch = 0 : i64, scratch_operands = 0 : i64, tpu.core_type = #tpu.core_type<tc>, window_params = [{transform_indices = @transform_0, window_bounds = array<i64: 1, 8, 128>}, {pipeline_mode = #tpu.pipeline_mode<synchronous>, transform_indices = @transform_1, window_bounds = array<i64: 16, 128>}, {pipeline_mode = #tpu.pipeline_mode<synchronous>, transform_indices = @transform_2, window_bounds = array<i64: 128, 384>}, {pipeline_mode = #tpu.pipeline_mode<synchronous>, transform_indices = @transform_3, window_bounds = array<i64: 128, 128>}, {pipeline_mode = #tpu.pipeline_mode<synchronous>, transform_indices = @transform_4, window_bounds = array<i64: 1, 128>}, {pipeline_mode = #tpu.pipeline_mode<synchronous>, transform_indices = @transform_5, window_bounds = array<i64: 1, 128>}, {pipeline_mode = #tpu.pipeline_mode<synchronous>, transform_indices = @transform_6, window_bounds = array<i64: 1, 128>}, {pipeline_mode = #tpu.pipeline_mode<synchronous>, transform_indices = @transform_7, window_bounds = array<i64: 2, 128>}, {transform_indices = @transform_8, window_bounds = array<i64: 1, 1, 8>}, {transform_indices = @transform_9, window_bounds = array<i64: 1, 8, 1>}, {transform_indices = @transform_10, window_bounds = array<i64: 1, 1, 8>}, {pipeline_mode = #tpu.pipeline_mode<synchronous>, transform_indices = @transform_11, window_bounds = array<i64: 128, 128>}, {pipeline_mode = #tpu.pipeline_mode<synchronous>, transform_indices = @transform_12, window_bounds = array<i64: 1, 128>}, {pipeline_mode = #tpu.pipeline_mode<synchronous>, transform_indices = @transform_13, window_bounds = array<i64: 1, 128>}, {transform_indices = @transform_14, window_bounds = array<i64: 1, 8, 128>}]} {
    %c0 = arith.constant 0 : index
    %c0_0 = arith.constant 0 : index
    %c0_1 = arith.constant 0 : index
    %0 = vector.load %arg1[%c0, %c0_0, %c0_1] : memref<1x8x128xf32, #tpu.memory_space<vmem>>, vector<1x8x128xf32>
    %1 = vector.shape_cast %0 : vector<1x8x128xf32> to vector<8x128xf32>
    %2 = arith.truncf %1 : vector<8x128xf32> to vector<8x128xbf16>
    %c0_2 = arith.constant 0 : index
    %c0_3 = arith.constant 0 : index
    %3 = vector.load %arg3[%c0_2, %c0_3] : memref<128x384xbf16, #tpu.memory_space<vmem>>, vector<128x384xbf16>
    %cst = arith.constant dense<0.000000e+00> : vector<8x384xf32>
    %4 = tpu.matmul %2, %3, %cst {dimension_numbers = #tpu.dot_dimension_numbers<[1], [0], [0], [1], [0, 0, 1, 1], [], []>} : vector<8x128xbf16>, vector<128x384xbf16>, vector<8x384xf32> -> vector<8x384xf32>
    %5 = vector.extract_strided_slice %4 {offsets = [0, 0], sizes = [8, 128], strides = [1, 1]} : vector<8x384xf32> to vector<8x128xf32>
    %6 = vector.extract_strided_slice %4 {offsets = [0, 128], sizes = [8, 128], strides = [1, 1]} : vector<8x384xf32> to vector<8x128xf32>
    %7 = vector.extract_strided_slice %4 {offsets = [0, 256], sizes = [8, 128], strides = [1, 1]} : vector<8x384xf32> to vector<8x128xf32>
    %c0_4 = arith.constant 0 : index
    %c0_5 = arith.constant 0 : index
    %8 = vector.load %arg2[%c0_4, %c0_5] : memref<16x128xbf16, #tpu.memory_space<vmem>>, vector<16x128xbf16>
    %c0_6 = arith.constant 0 : index
    %c0_7 = arith.constant 0 : index
    %9 = vector.load %arg4[%c0_6, %c0_7] : memref<128x128xbf16, #tpu.memory_space<vmem>>, vector<128x128xbf16>
    %cst_8 = arith.constant dense<0.000000e+00> : vector<16x128xf32>
    %10 = tpu.matmul %8, %9, %cst_8 {dimension_numbers = #tpu.dot_dimension_numbers<[1], [0], [0], [1], [0, 0, 1, 1], [], []>} : vector<16x128xbf16>, vector<128x128xbf16>, vector<16x128xf32> -> vector<16x128xf32>
    %c0_9 = arith.constant 0 : index
    %c0_10 = arith.constant 0 : index
    %11 = vector.load %arg5[%c0_9, %c0_10] : memref<1x128xf32, #tpu.memory_space<vmem>>, vector<1x128xf32>
    %12 = vector.broadcast %11 : vector<1x128xf32> to vector<8x128xf32>
    %13 = arith.addf %5, %12 : vector<8x128xf32>
    %c0_11 = arith.constant 0 : index
    %c0_12 = arith.constant 0 : index
    %14 = vector.load %arg6[%c0_11, %c0_12] : memref<1x128xf32, #tpu.memory_space<vmem>>, vector<1x128xf32>
    %15 = vector.broadcast %14 : vector<1x128xf32> to vector<8x128xf32>
    %16 = arith.addf %5, %15 : vector<8x128xf32>
    %c0_13 = arith.constant 0 : index
    %c0_14 = arith.constant 0 : index
    %17 = vector.load %arg7[%c0_13, %c0_14] : memref<1x128xf32, #tpu.memory_space<vmem>>, vector<1x128xf32>
    %18 = vector.broadcast %17 : vector<1x128xf32> to vector<8x128xf32>
    %19 = arith.addf %5, %18 : vector<8x128xf32>
    %c0_15 = arith.constant 0 : index
    %c0_16 = arith.constant 0 : index
    %20 = vector.load %arg8[%c0_15, %c0_16] : memref<2x128xf32, #tpu.memory_space<vmem>>, vector<2x128xf32>
    %c0_17 = arith.constant 0 : index
    %c0_18 = arith.constant 0 : index
    %c0_19 = arith.constant 0 : index
    %21 = vector.load %arg11[%c0_17, %c0_18, %c0_19] : memref<1x1x8xf32, #tpu.memory_space<vmem>>, vector<1x1x8xf32>
    %22 = vector.shape_cast %21 : vector<1x1x8xf32> to vector<1x8xf32>
    %23 = tpu.iota {dimensions = array<i32: 0>} : vector<8x8xi32>
    %24 = tpu.iota {dimensions = array<i32: 1>} : vector<8x8xi32>
    %25 = arith.cmpi ne, %23, %24 : vector<8x8xi32>
    %26 = arith.extui %25 : vector<8x8xi1> to vector<8x8xi32>
    %27 = arith.sitofp %26 : vector<8x8xi32> to vector<8x8xf32>
    %cst_20 = arith.constant 1.000000e+00 : f32
    %28 = vector.broadcast %cst_20 : f32 to vector<1x8xf32>
    %29 = arith.subf %28, %22 : vector<1x8xf32>
    %cst_21 = arith.constant -1.000000e+30 : f32
    %30 = vector.broadcast %cst_21 : f32 to vector<1x8xf32>
    %31 = arith.mulf %30, %29 : vector<1x8xf32>
    %32 = vector.broadcast %31 : vector<1x8xf32> to vector<8x8xf32>
    %33 = arith.mulf %32, %27 : vector<8x8xf32>
    %c0_22 = arith.constant 0 : index
    %c0_23 = arith.constant 0 : index
    %c0_24 = arith.constant 0 : index
    %34 = vector.load %arg10[%c0_22, %c0_23, %c0_24] : memref<1x8x1xf32, #tpu.memory_space<vmem>>, vector<1x8x1xf32>
    %35 = vector.shape_cast %34 : vector<1x8x1xf32> to vector<8x1xf32>
    %c0_25 = arith.constant 0 : index
    %c0_26 = arith.constant 0 : index
    %c0_27 = arith.constant 0 : index
    %36 = vector.load %arg9[%c0_25, %c0_26, %c0_27] : memref<1x1x8xf32, #tpu.memory_space<vmem>>, vector<1x1x8xf32>
    %37 = vector.shape_cast %36 : vector<1x1x8xf32> to vector<1x8xf32>
    %38 = vector.broadcast %35 : vector<8x1xf32> to vector<8x8xf32>
    %39 = vector.broadcast %37 : vector<1x8xf32> to vector<8x8xf32>
    %40 = arith.cmpf one, %38, %39 : vector<8x8xf32>
    %41 = vector.extract_strided_slice %13 {offsets = [0, 0], sizes = [8, 32], strides = [1, 1]} : vector<8x128xf32> to vector<8x32xf32>
    %42 = arith.truncf %41 : vector<8x32xf32> to vector<8x32xbf16>
    %43 = vector.extract_strided_slice %16 {offsets = [0, 0], sizes = [8, 32], strides = [1, 1]} : vector<8x128xf32> to vector<8x32xf32>
    %44 = arith.truncf %43 : vector<8x32xf32> to vector<8x32xbf16>
    %45 = vector.extract_strided_slice %19 {offsets = [0, 0], sizes = [8, 32], strides = [1, 1]} : vector<8x128xf32> to vector<8x32xf32>
    %46 = arith.truncf %45 : vector<8x32xf32> to vector<8x32xbf16>
    %47 = vector.extract_strided_slice %6 {offsets = [0, 0], sizes = [8, 32], strides = [1, 1]} : vector<8x128xf32> to vector<8x32xf32>
    %48 = arith.truncf %47 : vector<8x32xf32> to vector<8x32xbf16>
    %49 = vector.extract_strided_slice %7 {offsets = [0, 0], sizes = [8, 32], strides = [1, 1]} : vector<8x128xf32> to vector<8x32xf32>
    %50 = arith.truncf %49 : vector<8x32xf32> to vector<8x32xbf16>
    %51 = vector.extract_strided_slice %10 {offsets = [0, 0], sizes = [16, 32], strides = [1, 1]} : vector<16x128xf32> to vector<16x32xf32>
    %52 = arith.truncf %51 : vector<16x32xf32> to vector<16x32xbf16>
    %53 = vector.extract_strided_slice %20 {offsets = [0, 0], sizes = [2, 32], strides = [1, 1]} : vector<2x128xf32> to vector<2x32xf32>
    %54 = arith.truncf %53 : vector<2x32xf32> to vector<2x32xbf16>
    %cst_28 = arith.constant dense<0.000000e+00> : vector<8x8xf32>
    %55 = tpu.matmul %42, %48, %cst_28 {dimension_numbers = #tpu.dot_dimension_numbers<[1], [1], [0], [0], [0, 0, 1, 0], [], []>} : vector<8x32xbf16>, vector<8x32xbf16>, vector<8x8xf32> -> vector<8x8xf32>
    %cst_29 = arith.constant dense<0.000000e+00> : vector<8x16xf32>
    %56 = tpu.matmul %44, %52, %cst_29 {dimension_numbers = #tpu.dot_dimension_numbers<[1], [1], [0], [0], [0, 0, 1, 0], [], []>} : vector<8x32xbf16>, vector<16x32xbf16>, vector<8x16xf32> -> vector<8x16xf32>
    %57 = vector.extract_strided_slice %56 {offsets = [0, 8], sizes = [1, 8], strides = [1, 1]} : vector<8x16xf32> to vector<1x8xf32>
    %58 = vector.extract_strided_slice %56 {offsets = [1, 7], sizes = [1, 8], strides = [1, 1]} : vector<8x16xf32> to vector<1x8xf32>
    %59 = vector.extract_strided_slice %56 {offsets = [2, 6], sizes = [1, 8], strides = [1, 1]} : vector<8x16xf32> to vector<1x8xf32>
    %60 = vector.extract_strided_slice %56 {offsets = [3, 5], sizes = [1, 8], strides = [1, 1]} : vector<8x16xf32> to vector<1x8xf32>
    %61 = vector.extract_strided_slice %56 {offsets = [4, 4], sizes = [1, 8], strides = [1, 1]} : vector<8x16xf32> to vector<1x8xf32>
    %62 = vector.extract_strided_slice %56 {offsets = [5, 3], sizes = [1, 8], strides = [1, 1]} : vector<8x16xf32> to vector<1x8xf32>
    %63 = vector.extract_strided_slice %56 {offsets = [6, 2], sizes = [1, 8], strides = [1, 1]} : vector<8x16xf32> to vector<1x8xf32>
    %64 = vector.extract_strided_slice %56 {offsets = [7, 1], sizes = [1, 8], strides = [1, 1]} : vector<8x16xf32> to vector<1x8xf32>
    %65 = tpu.concatenate %57, %58, %59, %60, %61, %62, %63, %64 in 0 : vector<1x8xf32>, vector<1x8xf32>, vector<1x8xf32>, vector<1x8xf32>, vector<1x8xf32>, vector<1x8xf32>, vector<1x8xf32>, vector<1x8xf32> -> vector<8x8xf32>
    %cst_30 = arith.constant dense<0.000000e+00> : vector<8x2xf32>
    %66 = tpu.matmul %46, %54, %cst_30 {dimension_numbers = #tpu.dot_dimension_numbers<[1], [1], [0], [0], [0, 0, 1, 0], [], []>} : vector<8x32xbf16>, vector<2x32xbf16>, vector<8x2xf32> -> vector<8x2xf32>
    %67 = vector.extract_strided_slice %66 {offsets = [0, 1], sizes = [8, 1], strides = [1, 1]} : vector<8x2xf32> to vector<8x1xf32>
    %68 = vector.extract_strided_slice %66 {offsets = [0, 0], sizes = [8, 1], strides = [1, 1]} : vector<8x2xf32> to vector<8x1xf32>
    %69 = vector.shape_cast %67 : vector<8x1xf32> to vector<8x1xf32>
    %70 = vector.broadcast %69 : vector<8x1xf32> to vector<8x8xf32>
    %71 = vector.shape_cast %68 : vector<8x1xf32> to vector<8x1xf32>
    %72 = vector.broadcast %71 : vector<8x1xf32> to vector<8x8xf32>
    %73 = arith.select %40, %70, %72 : vector<8x8xi1>, vector<8x8xf32>
    %74 = arith.addf %55, %65 : vector<8x8xf32>
    %75 = arith.addf %74, %73 : vector<8x8xf32>
    %cst_31 = arith.constant 0.176776692 : f32
    %76 = vector.broadcast %cst_31 : f32 to vector<8x8xf32>
    %77 = arith.mulf %75, %76 : vector<8x8xf32>
    %78 = arith.addf %77, %33 : vector<8x8xf32>
    %cst_32 = arith.constant dense<0xFF800000> : vector<8xf32>
    %79 = vector.multi_reduction <maximumf>, %78, %cst_32 [1] : vector<8x8xf32> to vector<8xf32>
    %80 = vector.shape_cast %79 : vector<8xf32> to vector<8x1xf32>
    %81 = vector.broadcast %80 : vector<8x1xf32> to vector<8x8xf32>
    %82 = arith.subf %78, %81 : vector<8x8xf32>
    %83 = math.exp %82 : vector<8x8xf32>
    %cst_33 = arith.constant dense<0.000000e+00> : vector<8xf32>
    %84 = vector.multi_reduction <add>, %83, %cst_33 [1] : vector<8x8xf32> to vector<8xf32>
    %85 = vector.shape_cast %84 : vector<8xf32> to vector<8x1xf32>
    %86 = tpu.reciprocal %85 {approx = true} : vector<8x1xf32> -> vector<8x1xf32>
    %87 = vector.broadcast %86 : vector<8x1xf32> to vector<8x8xf32>
    %88 = arith.mulf %83, %87 : vector<8x8xf32>
    %89 = arith.truncf %88 : vector<8x8xf32> to vector<8x8xbf16>
    %cst_34 = arith.constant dense<0.000000e+00> : vector<8x32xf32>
    %90 = tpu.matmul %89, %50, %cst_34 {dimension_numbers = #tpu.dot_dimension_numbers<[1], [0], [0], [1], [0, 0, 1, 1], [], []>} : vector<8x8xbf16>, vector<8x32xbf16>, vector<8x32xf32> -> vector<8x32xf32>
    %91 = vector.extract_strided_slice %13 {offsets = [0, 32], sizes = [8, 32], strides = [1, 1]} : vector<8x128xf32> to vector<8x32xf32>
    %92 = arith.truncf %91 : vector<8x32xf32> to vector<8x32xbf16>
    %93 = vector.extract_strided_slice %16 {offsets = [0, 32], sizes = [8, 32], strides = [1, 1]} : vector<8x128xf32> to vector<8x32xf32>
    %94 = arith.truncf %93 : vector<8x32xf32> to vector<8x32xbf16>
    %95 = vector.extract_strided_slice %19 {offsets = [0, 32], sizes = [8, 32], strides = [1, 1]} : vector<8x128xf32> to vector<8x32xf32>
    %96 = arith.truncf %95 : vector<8x32xf32> to vector<8x32xbf16>
    %97 = vector.extract_strided_slice %6 {offsets = [0, 32], sizes = [8, 32], strides = [1, 1]} : vector<8x128xf32> to vector<8x32xf32>
    %98 = arith.truncf %97 : vector<8x32xf32> to vector<8x32xbf16>
    %99 = vector.extract_strided_slice %7 {offsets = [0, 32], sizes = [8, 32], strides = [1, 1]} : vector<8x128xf32> to vector<8x32xf32>
    %100 = arith.truncf %99 : vector<8x32xf32> to vector<8x32xbf16>
    %101 = vector.extract_strided_slice %10 {offsets = [0, 32], sizes = [16, 32], strides = [1, 1]} : vector<16x128xf32> to vector<16x32xf32>
    %102 = arith.truncf %101 : vector<16x32xf32> to vector<16x32xbf16>
    %103 = vector.extract_strided_slice %20 {offsets = [0, 32], sizes = [2, 32], strides = [1, 1]} : vector<2x128xf32> to vector<2x32xf32>
    %104 = arith.truncf %103 : vector<2x32xf32> to vector<2x32xbf16>
    %cst_35 = arith.constant dense<0.000000e+00> : vector<8x8xf32>
    %105 = tpu.matmul %92, %98, %cst_35 {dimension_numbers = #tpu.dot_dimension_numbers<[1], [1], [0], [0], [0, 0, 1, 0], [], []>} : vector<8x32xbf16>, vector<8x32xbf16>, vector<8x8xf32> -> vector<8x8xf32>
    %cst_36 = arith.constant dense<0.000000e+00> : vector<8x16xf32>
    %106 = tpu.matmul %94, %102, %cst_36 {dimension_numbers = #tpu.dot_dimension_numbers<[1], [1], [0], [0], [0, 0, 1, 0], [], []>} : vector<8x32xbf16>, vector<16x32xbf16>, vector<8x16xf32> -> vector<8x16xf32>
    %107 = vector.extract_strided_slice %106 {offsets = [0, 8], sizes = [1, 8], strides = [1, 1]} : vector<8x16xf32> to vector<1x8xf32>
    %108 = vector.extract_strided_slice %106 {offsets = [1, 7], sizes = [1, 8], strides = [1, 1]} : vector<8x16xf32> to vector<1x8xf32>
    %109 = vector.extract_strided_slice %106 {offsets = [2, 6], sizes = [1, 8], strides = [1, 1]} : vector<8x16xf32> to vector<1x8xf32>
    %110 = vector.extract_strided_slice %106 {offsets = [3, 5], sizes = [1, 8], strides = [1, 1]} : vector<8x16xf32> to vector<1x8xf32>
    %111 = vector.extract_strided_slice %106 {offsets = [4, 4], sizes = [1, 8], strides = [1, 1]} : vector<8x16xf32> to vector<1x8xf32>
    %112 = vector.extract_strided_slice %106 {offsets = [5, 3], sizes = [1, 8], strides = [1, 1]} : vector<8x16xf32> to vector<1x8xf32>
    %113 = vector.extract_strided_slice %106 {offsets = [6, 2], sizes = [1, 8], strides = [1, 1]} : vector<8x16xf32> to vector<1x8xf32>
    %114 = vector.extract_strided_slice %106 {offsets = [7, 1], sizes = [1, 8], strides = [1, 1]} : vector<8x16xf32> to vector<1x8xf32>
    %115 = tpu.concatenate %107, %108, %109, %110, %111, %112, %113, %114 in 0 : vector<1x8xf32>, vector<1x8xf32>, vector<1x8xf32>, vector<1x8xf32>, vector<1x8xf32>, vector<1x8xf32>, vector<1x8xf32>, vector<1x8xf32> -> vector<8x8xf32>
    %cst_37 = arith.constant dense<0.000000e+00> : vector<8x2xf32>
    %116 = tpu.matmul %96, %104, %cst_37 {dimension_numbers = #tpu.dot_dimension_numbers<[1], [1], [0], [0], [0, 0, 1, 0], [], []>} : vector<8x32xbf16>, vector<2x32xbf16>, vector<8x2xf32> -> vector<8x2xf32>
    %117 = vector.extract_strided_slice %116 {offsets = [0, 1], sizes = [8, 1], strides = [1, 1]} : vector<8x2xf32> to vector<8x1xf32>
    %118 = vector.extract_strided_slice %116 {offsets = [0, 0], sizes = [8, 1], strides = [1, 1]} : vector<8x2xf32> to vector<8x1xf32>
    %119 = vector.shape_cast %117 : vector<8x1xf32> to vector<8x1xf32>
    %120 = vector.broadcast %119 : vector<8x1xf32> to vector<8x8xf32>
    %121 = vector.shape_cast %118 : vector<8x1xf32> to vector<8x1xf32>
    %122 = vector.broadcast %121 : vector<8x1xf32> to vector<8x8xf32>
    %123 = arith.select %40, %120, %122 : vector<8x8xi1>, vector<8x8xf32>
    %124 = arith.addf %105, %115 : vector<8x8xf32>
    %125 = arith.addf %124, %123 : vector<8x8xf32>
    %cst_38 = arith.constant 0.176776692 : f32
    %126 = vector.broadcast %cst_38 : f32 to vector<8x8xf32>
    %127 = arith.mulf %125, %126 : vector<8x8xf32>
    %128 = arith.addf %127, %33 : vector<8x8xf32>
    %cst_39 = arith.constant dense<0xFF800000> : vector<8xf32>
    %129 = vector.multi_reduction <maximumf>, %128, %cst_39 [1] : vector<8x8xf32> to vector<8xf32>
    %130 = vector.shape_cast %129 : vector<8xf32> to vector<8x1xf32>
    %131 = vector.broadcast %130 : vector<8x1xf32> to vector<8x8xf32>
    %132 = arith.subf %128, %131 : vector<8x8xf32>
    %133 = math.exp %132 : vector<8x8xf32>
    %cst_40 = arith.constant dense<0.000000e+00> : vector<8xf32>
    %134 = vector.multi_reduction <add>, %133, %cst_40 [1] : vector<8x8xf32> to vector<8xf32>
    %135 = vector.shape_cast %134 : vector<8xf32> to vector<8x1xf32>
    %136 = tpu.reciprocal %135 {approx = true} : vector<8x1xf32> -> vector<8x1xf32>
    %137 = vector.broadcast %136 : vector<8x1xf32> to vector<8x8xf32>
    %138 = arith.mulf %133, %137 : vector<8x8xf32>
    %139 = arith.truncf %138 : vector<8x8xf32> to vector<8x8xbf16>
    %cst_41 = arith.constant dense<0.000000e+00> : vector<8x32xf32>
    %140 = tpu.matmul %139, %100, %cst_41 {dimension_numbers = #tpu.dot_dimension_numbers<[1], [0], [0], [1], [0, 0, 1, 1], [], []>} : vector<8x8xbf16>, vector<8x32xbf16>, vector<8x32xf32> -> vector<8x32xf32>
    %141 = vector.extract_strided_slice %13 {offsets = [0, 64], sizes = [8, 32], strides = [1, 1]} : vector<8x128xf32> to vector<8x32xf32>
    %142 = arith.truncf %141 : vector<8x32xf32> to vector<8x32xbf16>
    %143 = vector.extract_strided_slice %16 {offsets = [0, 64], sizes = [8, 32], strides = [1, 1]} : vector<8x128xf32> to vector<8x32xf32>
    %144 = arith.truncf %143 : vector<8x32xf32> to vector<8x32xbf16>
    %145 = vector.extract_strided_slice %19 {offsets = [0, 64], sizes = [8, 32], strides = [1, 1]} : vector<8x128xf32> to vector<8x32xf32>
    %146 = arith.truncf %145 : vector<8x32xf32> to vector<8x32xbf16>
    %147 = vector.extract_strided_slice %6 {offsets = [0, 64], sizes = [8, 32], strides = [1, 1]} : vector<8x128xf32> to vector<8x32xf32>
    %148 = arith.truncf %147 : vector<8x32xf32> to vector<8x32xbf16>
    %149 = vector.extract_strided_slice %7 {offsets = [0, 64], sizes = [8, 32], strides = [1, 1]} : vector<8x128xf32> to vector<8x32xf32>
    %150 = arith.truncf %149 : vector<8x32xf32> to vector<8x32xbf16>
    %151 = vector.extract_strided_slice %10 {offsets = [0, 64], sizes = [16, 32], strides = [1, 1]} : vector<16x128xf32> to vector<16x32xf32>
    %152 = arith.truncf %151 : vector<16x32xf32> to vector<16x32xbf16>
    %153 = vector.extract_strided_slice %20 {offsets = [0, 64], sizes = [2, 32], strides = [1, 1]} : vector<2x128xf32> to vector<2x32xf32>
    %154 = arith.truncf %153 : vector<2x32xf32> to vector<2x32xbf16>
    %cst_42 = arith.constant dense<0.000000e+00> : vector<8x8xf32>
    %155 = tpu.matmul %142, %148, %cst_42 {dimension_numbers = #tpu.dot_dimension_numbers<[1], [1], [0], [0], [0, 0, 1, 0], [], []>} : vector<8x32xbf16>, vector<8x32xbf16>, vector<8x8xf32> -> vector<8x8xf32>
    %cst_43 = arith.constant dense<0.000000e+00> : vector<8x16xf32>
    %156 = tpu.matmul %144, %152, %cst_43 {dimension_numbers = #tpu.dot_dimension_numbers<[1], [1], [0], [0], [0, 0, 1, 0], [], []>} : vector<8x32xbf16>, vector<16x32xbf16>, vector<8x16xf32> -> vector<8x16xf32>
    %157 = vector.extract_strided_slice %156 {offsets = [0, 8], sizes = [1, 8], strides = [1, 1]} : vector<8x16xf32> to vector<1x8xf32>
    %158 = vector.extract_strided_slice %156 {offsets = [1, 7], sizes = [1, 8], strides = [1, 1]} : vector<8x16xf32> to vector<1x8xf32>
    %159 = vector.extract_strided_slice %156 {offsets = [2, 6], sizes = [1, 8], strides = [1, 1]} : vector<8x16xf32> to vector<1x8xf32>
    %160 = vector.extract_strided_slice %156 {offsets = [3, 5], sizes = [1, 8], strides = [1, 1]} : vector<8x16xf32> to vector<1x8xf32>
    %161 = vector.extract_strided_slice %156 {offsets = [4, 4], sizes = [1, 8], strides = [1, 1]} : vector<8x16xf32> to vector<1x8xf32>
    %162 = vector.extract_strided_slice %156 {offsets = [5, 3], sizes = [1, 8], strides = [1, 1]} : vector<8x16xf32> to vector<1x8xf32>
    %163 = vector.extract_strided_slice %156 {offsets = [6, 2], sizes = [1, 8], strides = [1, 1]} : vector<8x16xf32> to vector<1x8xf32>
    %164 = vector.extract_strided_slice %156 {offsets = [7, 1], sizes = [1, 8], strides = [1, 1]} : vector<8x16xf32> to vector<1x8xf32>
    %165 = tpu.concatenate %157, %158, %159, %160, %161, %162, %163, %164 in 0 : vector<1x8xf32>, vector<1x8xf32>, vector<1x8xf32>, vector<1x8xf32>, vector<1x8xf32>, vector<1x8xf32>, vector<1x8xf32>, vector<1x8xf32> -> vector<8x8xf32>
    %cst_44 = arith.constant dense<0.000000e+00> : vector<8x2xf32>
    %166 = tpu.matmul %146, %154, %cst_44 {dimension_numbers = #tpu.dot_dimension_numbers<[1], [1], [0], [0], [0, 0, 1, 0], [], []>} : vector<8x32xbf16>, vector<2x32xbf16>, vector<8x2xf32> -> vector<8x2xf32>
    %167 = vector.extract_strided_slice %166 {offsets = [0, 1], sizes = [8, 1], strides = [1, 1]} : vector<8x2xf32> to vector<8x1xf32>
    %168 = vector.extract_strided_slice %166 {offsets = [0, 0], sizes = [8, 1], strides = [1, 1]} : vector<8x2xf32> to vector<8x1xf32>
    %169 = vector.shape_cast %167 : vector<8x1xf32> to vector<8x1xf32>
    %170 = vector.broadcast %169 : vector<8x1xf32> to vector<8x8xf32>
    %171 = vector.shape_cast %168 : vector<8x1xf32> to vector<8x1xf32>
    %172 = vector.broadcast %171 : vector<8x1xf32> to vector<8x8xf32>
    %173 = arith.select %40, %170, %172 : vector<8x8xi1>, vector<8x8xf32>
    %174 = arith.addf %155, %165 : vector<8x8xf32>
    %175 = arith.addf %174, %173 : vector<8x8xf32>
    %cst_45 = arith.constant 0.176776692 : f32
    %176 = vector.broadcast %cst_45 : f32 to vector<8x8xf32>
    %177 = arith.mulf %175, %176 : vector<8x8xf32>
    %178 = arith.addf %177, %33 : vector<8x8xf32>
    %cst_46 = arith.constant dense<0xFF800000> : vector<8xf32>
    %179 = vector.multi_reduction <maximumf>, %178, %cst_46 [1] : vector<8x8xf32> to vector<8xf32>
    %180 = vector.shape_cast %179 : vector<8xf32> to vector<8x1xf32>
    %181 = vector.broadcast %180 : vector<8x1xf32> to vector<8x8xf32>
    %182 = arith.subf %178, %181 : vector<8x8xf32>
    %183 = math.exp %182 : vector<8x8xf32>
    %cst_47 = arith.constant dense<0.000000e+00> : vector<8xf32>
    %184 = vector.multi_reduction <add>, %183, %cst_47 [1] : vector<8x8xf32> to vector<8xf32>
    %185 = vector.shape_cast %184 : vector<8xf32> to vector<8x1xf32>
    %186 = tpu.reciprocal %185 {approx = true} : vector<8x1xf32> -> vector<8x1xf32>
    %187 = vector.broadcast %186 : vector<8x1xf32> to vector<8x8xf32>
    %188 = arith.mulf %183, %187 : vector<8x8xf32>
    %189 = arith.truncf %188 : vector<8x8xf32> to vector<8x8xbf16>
    %cst_48 = arith.constant dense<0.000000e+00> : vector<8x32xf32>
    %190 = tpu.matmul %189, %150, %cst_48 {dimension_numbers = #tpu.dot_dimension_numbers<[1], [0], [0], [1], [0, 0, 1, 1], [], []>} : vector<8x8xbf16>, vector<8x32xbf16>, vector<8x32xf32> -> vector<8x32xf32>
    %191 = vector.extract_strided_slice %13 {offsets = [0, 96], sizes = [8, 32], strides = [1, 1]} : vector<8x128xf32> to vector<8x32xf32>
    %192 = arith.truncf %191 : vector<8x32xf32> to vector<8x32xbf16>
    %193 = vector.extract_strided_slice %16 {offsets = [0, 96], sizes = [8, 32], strides = [1, 1]} : vector<8x128xf32> to vector<8x32xf32>
    %194 = arith.truncf %193 : vector<8x32xf32> to vector<8x32xbf16>
    %195 = vector.extract_strided_slice %19 {offsets = [0, 96], sizes = [8, 32], strides = [1, 1]} : vector<8x128xf32> to vector<8x32xf32>
    %196 = arith.truncf %195 : vector<8x32xf32> to vector<8x32xbf16>
    %197 = vector.extract_strided_slice %6 {offsets = [0, 96], sizes = [8, 32], strides = [1, 1]} : vector<8x128xf32> to vector<8x32xf32>
    %198 = arith.truncf %197 : vector<8x32xf32> to vector<8x32xbf16>
    %199 = vector.extract_strided_slice %7 {offsets = [0, 96], sizes = [8, 32], strides = [1, 1]} : vector<8x128xf32> to vector<8x32xf32>
    %200 = arith.truncf %199 : vector<8x32xf32> to vector<8x32xbf16>
    %201 = vector.extract_strided_slice %10 {offsets = [0, 96], sizes = [16, 32], strides = [1, 1]} : vector<16x128xf32> to vector<16x32xf32>
    %202 = arith.truncf %201 : vector<16x32xf32> to vector<16x32xbf16>
    %203 = vector.extract_strided_slice %20 {offsets = [0, 96], sizes = [2, 32], strides = [1, 1]} : vector<2x128xf32> to vector<2x32xf32>
    %204 = arith.truncf %203 : vector<2x32xf32> to vector<2x32xbf16>
    %cst_49 = arith.constant dense<0.000000e+00> : vector<8x8xf32>
    %205 = tpu.matmul %192, %198, %cst_49 {dimension_numbers = #tpu.dot_dimension_numbers<[1], [1], [0], [0], [0, 0, 1, 0], [], []>} : vector<8x32xbf16>, vector<8x32xbf16>, vector<8x8xf32> -> vector<8x8xf32>
    %cst_50 = arith.constant dense<0.000000e+00> : vector<8x16xf32>
    %206 = tpu.matmul %194, %202, %cst_50 {dimension_numbers = #tpu.dot_dimension_numbers<[1], [1], [0], [0], [0, 0, 1, 0], [], []>} : vector<8x32xbf16>, vector<16x32xbf16>, vector<8x16xf32> -> vector<8x16xf32>
    %207 = vector.extract_strided_slice %206 {offsets = [0, 8], sizes = [1, 8], strides = [1, 1]} : vector<8x16xf32> to vector<1x8xf32>
    %208 = vector.extract_strided_slice %206 {offsets = [1, 7], sizes = [1, 8], strides = [1, 1]} : vector<8x16xf32> to vector<1x8xf32>
    %209 = vector.extract_strided_slice %206 {offsets = [2, 6], sizes = [1, 8], strides = [1, 1]} : vector<8x16xf32> to vector<1x8xf32>
    %210 = vector.extract_strided_slice %206 {offsets = [3, 5], sizes = [1, 8], strides = [1, 1]} : vector<8x16xf32> to vector<1x8xf32>
    %211 = vector.extract_strided_slice %206 {offsets = [4, 4], sizes = [1, 8], strides = [1, 1]} : vector<8x16xf32> to vector<1x8xf32>
    %212 = vector.extract_strided_slice %206 {offsets = [5, 3], sizes = [1, 8], strides = [1, 1]} : vector<8x16xf32> to vector<1x8xf32>
    %213 = vector.extract_strided_slice %206 {offsets = [6, 2], sizes = [1, 8], strides = [1, 1]} : vector<8x16xf32> to vector<1x8xf32>
    %214 = vector.extract_strided_slice %206 {offsets = [7, 1], sizes = [1, 8], strides = [1, 1]} : vector<8x16xf32> to vector<1x8xf32>
    %215 = tpu.concatenate %207, %208, %209, %210, %211, %212, %213, %214 in 0 : vector<1x8xf32>, vector<1x8xf32>, vector<1x8xf32>, vector<1x8xf32>, vector<1x8xf32>, vector<1x8xf32>, vector<1x8xf32>, vector<1x8xf32> -> vector<8x8xf32>
    %cst_51 = arith.constant dense<0.000000e+00> : vector<8x2xf32>
    %216 = tpu.matmul %196, %204, %cst_51 {dimension_numbers = #tpu.dot_dimension_numbers<[1], [1], [0], [0], [0, 0, 1, 0], [], []>} : vector<8x32xbf16>, vector<2x32xbf16>, vector<8x2xf32> -> vector<8x2xf32>
    %217 = vector.extract_strided_slice %216 {offsets = [0, 1], sizes = [8, 1], strides = [1, 1]} : vector<8x2xf32> to vector<8x1xf32>
    %218 = vector.extract_strided_slice %216 {offsets = [0, 0], sizes = [8, 1], strides = [1, 1]} : vector<8x2xf32> to vector<8x1xf32>
    %219 = vector.shape_cast %217 : vector<8x1xf32> to vector<8x1xf32>
    %220 = vector.broadcast %219 : vector<8x1xf32> to vector<8x8xf32>
    %221 = vector.shape_cast %218 : vector<8x1xf32> to vector<8x1xf32>
    %222 = vector.broadcast %221 : vector<8x1xf32> to vector<8x8xf32>
    %223 = arith.select %40, %220, %222 : vector<8x8xi1>, vector<8x8xf32>
    %224 = arith.addf %205, %215 : vector<8x8xf32>
    %225 = arith.addf %224, %223 : vector<8x8xf32>
    %cst_52 = arith.constant 0.176776692 : f32
    %226 = vector.broadcast %cst_52 : f32 to vector<8x8xf32>
    %227 = arith.mulf %225, %226 : vector<8x8xf32>
    %228 = arith.addf %227, %33 : vector<8x8xf32>
    %cst_53 = arith.constant dense<0xFF800000> : vector<8xf32>
    %229 = vector.multi_reduction <maximumf>, %228, %cst_53 [1] : vector<8x8xf32> to vector<8xf32>
    %230 = vector.shape_cast %229 : vector<8xf32> to vector<8x1xf32>
    %231 = vector.broadcast %230 : vector<8x1xf32> to vector<8x8xf32>
    %232 = arith.subf %228, %231 : vector<8x8xf32>
    %233 = math.exp %232 : vector<8x8xf32>
    %cst_54 = arith.constant dense<0.000000e+00> : vector<8xf32>
    %234 = vector.multi_reduction <add>, %233, %cst_54 [1] : vector<8x8xf32> to vector<8xf32>
    %235 = vector.shape_cast %234 : vector<8xf32> to vector<8x1xf32>
    %236 = tpu.reciprocal %235 {approx = true} : vector<8x1xf32> -> vector<8x1xf32>
    %237 = vector.broadcast %236 : vector<8x1xf32> to vector<8x8xf32>
    %238 = arith.mulf %233, %237 : vector<8x8xf32>
    %239 = arith.truncf %238 : vector<8x8xf32> to vector<8x8xbf16>
    %cst_55 = arith.constant dense<0.000000e+00> : vector<8x32xf32>
    %240 = tpu.matmul %239, %200, %cst_55 {dimension_numbers = #tpu.dot_dimension_numbers<[1], [0], [0], [1], [0, 0, 1, 1], [], []>} : vector<8x8xbf16>, vector<8x32xbf16>, vector<8x32xf32> -> vector<8x32xf32>
    %241 = tpu.concatenate %90, %140, %190, %240 in 1 : vector<8x32xf32>, vector<8x32xf32>, vector<8x32xf32>, vector<8x32xf32> -> vector<8x128xf32>
    %242 = arith.truncf %241 : vector<8x128xf32> to vector<8x128xbf16>
    %c0_56 = arith.constant 0 : index
    %c0_57 = arith.constant 0 : index
    %243 = vector.load %arg12[%c0_56, %c0_57] : memref<128x128xbf16, #tpu.memory_space<vmem>>, vector<128x128xbf16>
    %cst_58 = arith.constant dense<0.000000e+00> : vector<8x128xf32>
    %244 = tpu.matmul %242, %243, %cst_58 {dimension_numbers = #tpu.dot_dimension_numbers<[1], [0], [0], [1], [0, 0, 1, 1], [], []>} : vector<8x128xbf16>, vector<128x128xbf16>, vector<8x128xf32> -> vector<8x128xf32>
    %245 = arith.addf %244, %1 : vector<8x128xf32>
    %c0_59 = arith.constant 0 : index
    %c0_60 = arith.constant 0 : index
    %246 = vector.load %arg13[%c0_59, %c0_60] : memref<1x128xf32, #tpu.memory_space<vmem>>, vector<1x128xf32>
    %c0_61 = arith.constant 0 : index
    %c0_62 = arith.constant 0 : index
    %247 = vector.load %arg14[%c0_61, %c0_62] : memref<1x128xf32, #tpu.memory_space<vmem>>, vector<1x128xf32>
    %cst_63 = arith.constant dense<0.000000e+00> : vector<8xf32>
    %248 = vector.multi_reduction <add>, %245, %cst_63 [1] : vector<8x128xf32> to vector<8xf32>
    %249 = vector.shape_cast %248 : vector<8xf32> to vector<8x1xf32>
    %cst_64 = arith.constant 1.280000e+02 : f32
    %250 = vector.broadcast %cst_64 : f32 to vector<8x1xf32>
    %251 = arith.divf %249, %250 : vector<8x1xf32>
    %252 = vector.broadcast %251 : vector<8x1xf32> to vector<8x128xf32>
    %253 = arith.subf %245, %252 : vector<8x128xf32>
    %254 = arith.mulf %253, %253 : vector<8x128xf32>
    %cst_65 = arith.constant dense<0.000000e+00> : vector<8xf32>
    %255 = vector.multi_reduction <add>, %254, %cst_65 [1] : vector<8x128xf32> to vector<8xf32>
    %256 = vector.shape_cast %255 : vector<8xf32> to vector<8x1xf32>
    %cst_66 = arith.constant 1.280000e+02 : f32
    %257 = vector.broadcast %cst_66 : f32 to vector<8x1xf32>
    %258 = arith.divf %256, %257 : vector<8x1xf32>
    %cst_67 = arith.constant 9.99999996E-13 : f32
    %259 = vector.broadcast %cst_67 : f32 to vector<8x1xf32>
    %260 = arith.addf %258, %259 : vector<8x1xf32>
    %261 = math.rsqrt %260 : vector<8x1xf32>
    %262 = vector.broadcast %261 : vector<8x1xf32> to vector<8x128xf32>
    %263 = arith.mulf %253, %262 : vector<8x128xf32>
    %264 = vector.broadcast %246 : vector<1x128xf32> to vector<8x128xf32>
    %265 = arith.mulf %263, %264 : vector<8x128xf32>
    %266 = vector.broadcast %247 : vector<1x128xf32> to vector<8x128xf32>
    %267 = arith.addf %265, %266 : vector<8x128xf32>
    %c0_68 = arith.constant 0 : index
    %c0_69 = arith.constant 0 : index
    %c0_70 = arith.constant 0 : index
    %268 = vector.load %arg15[%c0_68, %c0_69, %c0_70] : memref<1x8x128xf32, #tpu.memory_space<vmem>>, vector<1x8x128xf32>
    %269 = vector.shape_cast %268 : vector<1x8x128xf32> to vector<8x128xf32>
    %270 = vector.shape_cast %267 : vector<8x128xf32> to vector<1x8x128xf32>
    tpu.vector_store %arg15[%c0_68, %c0_69, %c0_70], %270 {strides = array<i32>} : memref<1x8x128xf32, #tpu.memory_space<vmem>>, vector<1x8x128xf32>,
    return
  }
  func.func @transform_0(%arg0: i32) -> (i32, i32, i32) {
    %c0_i32 = arith.constant 0 : i32
    %c0_i32_0 = arith.constant 0 : i32
    %c0_i32_1 = arith.constant 0 : i32
    return %arg0, %c0_i32, %c0_i32_0 : i32, i32, i32
  }
  func.func @transform_1(%arg0: i32) -> (i32, i32) {
    %c0_i32 = arith.constant 0 : i32
    %c0_i32_0 = arith.constant 0 : i32
    %c0_i32_1 = arith.constant 0 : i32
    return %c0_i32, %c0_i32_0 : i32, i32
  }
  func.func @transform_2(%arg0: i32) -> (i32, i32) {
    %c0_i32 = arith.constant 0 : i32
    %c0_i32_0 = arith.constant 0 : i32
    %c0_i32_1 = arith.constant 0 : i32
    return %c0_i32, %c0_i32_0 : i32, i32
  }
  func.func @transform_3(%arg0: i32) -> (i32, i32) {
    %c0_i32 = arith.constant 0 : i32
    %c0_i32_0 = arith.constant 0 : i32
    %c0_i32_1 = arith.constant 0 : i32
    return %c0_i32, %c0_i32_0 : i32, i32
  }
  func.func @transform_4(%arg0: i32) -> (i32, i32) {
    %c0_i32 = arith.constant 0 : i32
    %c0_i32_0 = arith.constant 0 : i32
    %c0_i32_1 = arith.constant 0 : i32
    return %c0_i32, %c0_i32_0 : i32, i32
  }
  func.func @transform_5(%arg0: i32) -> (i32, i32) {
    %c0_i32 = arith.constant 0 : i32
    %c0_i32_0 = arith.constant 0 : i32
    %c0_i32_1 = arith.constant 0 : i32
    return %c0_i32, %c0_i32_0 : i32, i32
  }
  func.func @transform_6(%arg0: i32) -> (i32, i32) {
    %c0_i32 = arith.constant 0 : i32
    %c0_i32_0 = arith.constant 0 : i32
    %c0_i32_1 = arith.constant 0 : i32
    return %c0_i32, %c0_i32_0 : i32, i32
  }
  func.func @transform_7(%arg0: i32) -> (i32, i32) {
    %c0_i32 = arith.constant 0 : i32
    %c0_i32_0 = arith.constant 0 : i32
    %c0_i32_1 = arith.constant 0 : i32
    return %c0_i32, %c0_i32_0 : i32, i32
  }
  func.func @transform_8(%arg0: i32) -> (i32, i32, i32) {
    %c0_i32 = arith.constant 0 : i32
    %c0_i32_0 = arith.constant 0 : i32
    %c0_i32_1 = arith.constant 0 : i32
    return %arg0, %c0_i32, %c0_i32_0 : i32, i32, i32
  }
  func.func @transform_9(%arg0: i32) -> (i32, i32, i32) {
    %c0_i32 = arith.constant 0 : i32
    %c0_i32_0 = arith.constant 0 : i32
    %c0_i32_1 = arith.constant 0 : i32
    return %arg0, %c0_i32, %c0_i32_0 : i32, i32, i32
  }
  func.func @transform_10(%arg0: i32) -> (i32, i32, i32) {
    %c0_i32 = arith.constant 0 : i32
    %c0_i32_0 = arith.constant 0 : i32
    %c0_i32_1 = arith.constant 0 : i32
    return %arg0, %c0_i32, %c0_i32_0 : i32, i32, i32
  }
  func.func @transform_11(%arg0: i32) -> (i32, i32) {
    %c0_i32 = arith.constant 0 : i32
    %c0_i32_0 = arith.constant 0 : i32
    %c0_i32_1 = arith.constant 0 : i32
    return %c0_i32, %c0_i32_0 : i32, i32
  }
  func.func @transform_12(%arg0: i32) -> (i32, i32) {
    %c0_i32 = arith.constant 0 : i32
    %c0_i32_0 = arith.constant 0 : i32
    %c0_i32_1 = arith.constant 0 : i32
    return %c0_i32, %c0_i32_0 : i32, i32
  }
  func.func @transform_13(%arg0: i32) -> (i32, i32) {
    %c0_i32 = arith.constant 0 : i32
    %c0_i32_0 = arith.constant 0 : i32
    %c0_i32_1 = arith.constant 0 : i32
    return %c0_i32, %c0_i32_0 : i32, i32
  }
  func.func @transform_14(%arg0: i32) -> (i32, i32, i32) {
    %c0_i32 = arith.constant 0 : i32
    %c0_i32_0 = arith.constant 0 : i32
    %c0_i32_1 = arith.constant 0 : i32
    return %arg0, %c0_i32, %c0_i32_0 : i32, i32, i32
  }
}

module attributes {stable_mosaic.version = 11 : i64} {
  func.func @_ffn_ln_kernel(%arg0: i32, %arg1: memref<16x128xf32, #tpu.memory_space<vmem>>, %arg2: memref<128x256xbf16, #tpu.memory_space<vmem>>, %arg3: memref<1x256xf32, #tpu.memory_space<vmem>>, %arg4: memref<256x128xbf16, #tpu.memory_space<vmem>>, %arg5: memref<1x128xf32, #tpu.memory_space<vmem>>, %arg6: memref<1x128xf32, #tpu.memory_space<vmem>>, %arg7: memref<1x128xf32, #tpu.memory_space<vmem>>, %arg8: memref<16x128xf32, #tpu.memory_space<vmem>>) attributes {dimension_semantics = [#tpu.dimension_semantics<parallel>], iteration_bounds = array<i64: 1>, scalar_prefetch = 0 : i64, scratch_operands = 0 : i64, tpu.core_type = #tpu.core_type<tc>, window_params = [{transform_indices = @transform_0, window_bounds = array<i64: 16, 128>}, {pipeline_mode = #tpu.pipeline_mode<synchronous>, transform_indices = @transform_1, window_bounds = array<i64: 128, 256>}, {pipeline_mode = #tpu.pipeline_mode<synchronous>, transform_indices = @transform_2, window_bounds = array<i64: 1, 256>}, {pipeline_mode = #tpu.pipeline_mode<synchronous>, transform_indices = @transform_3, window_bounds = array<i64: 256, 128>}, {pipeline_mode = #tpu.pipeline_mode<synchronous>, transform_indices = @transform_4, window_bounds = array<i64: 1, 128>}, {pipeline_mode = #tpu.pipeline_mode<synchronous>, transform_indices = @transform_5, window_bounds = array<i64: 1, 128>}, {pipeline_mode = #tpu.pipeline_mode<synchronous>, transform_indices = @transform_6, window_bounds = array<i64: 1, 128>}, {transform_indices = @transform_7, window_bounds = array<i64: 16, 128>}]} {
    %c0 = arith.constant 0 : index
    %c0_0 = arith.constant 0 : index
    %0 = vector.load %arg1[%c0, %c0_0] : memref<16x128xf32, #tpu.memory_space<vmem>>, vector<16x128xf32>
    %1 = arith.truncf %0 : vector<16x128xf32> to vector<16x128xbf16>
    %c0_1 = arith.constant 0 : index
    %c0_2 = arith.constant 0 : index
    %2 = vector.load %arg2[%c0_1, %c0_2] : memref<128x256xbf16, #tpu.memory_space<vmem>>, vector<128x256xbf16>
    %cst = arith.constant dense<0.000000e+00> : vector<16x256xf32>
    %3 = tpu.matmul %1, %2, %cst {dimension_numbers = #tpu.dot_dimension_numbers<[1], [0], [0], [1], [0, 0, 1, 1], [], []>} : vector<16x128xbf16>, vector<128x256xbf16>, vector<16x256xf32> -> vector<16x256xf32>
    %c0_3 = arith.constant 0 : index
    %c0_4 = arith.constant 0 : index
    %4 = vector.load %arg3[%c0_3, %c0_4] : memref<1x256xf32, #tpu.memory_space<vmem>>, vector<1x256xf32>
    %5 = vector.broadcast %4 : vector<1x256xf32> to vector<16x256xf32>
    %6 = arith.addf %3, %5 : vector<16x256xf32>
    %cst_5 = arith.constant 5.000000e-01 : f32
    %7 = vector.broadcast %cst_5 : f32 to vector<16x256xf32>
    %8 = arith.mulf %6, %7 : vector<16x256xf32>
    %cst_6 = arith.constant 0.707106769 : f32
    %9 = vector.broadcast %cst_6 : f32 to vector<16x256xf32>
    %10 = arith.mulf %6, %9 : vector<16x256xf32>
    %cst_7 = arith.constant 0.000000e+00 : f32
    %11 = vector.broadcast %cst_7 : f32 to vector<16x256xf32>
    %12 = arith.cmpf olt, %10, %11 : vector<16x256xf32>
    %cst_8 = arith.constant -1.000000e+00 : f32
    %cst_9 = arith.constant 1.000000e+00 : f32
    %13 = vector.broadcast %cst_8 : f32 to vector<16x256xf32>
    %14 = vector.broadcast %cst_9 : f32 to vector<16x256xf32>
    %15 = arith.select %12, %13, %14 : vector<16x256xi1>, vector<16x256xf32>
    %16 = math.absf %10 : vector<16x256xf32>
    %cst_10 = arith.constant 0.327591091 : f32
    %17 = vector.broadcast %cst_10 : f32 to vector<16x256xf32>
    %18 = arith.mulf %17, %16 : vector<16x256xf32>
    %cst_11 = arith.constant 1.000000e+00 : f32
    %19 = vector.broadcast %cst_11 : f32 to vector<16x256xf32>
    %20 = arith.addf %19, %18 : vector<16x256xf32>
    %cst_12 = arith.constant 1.000000e+00 : f32
    %21 = vector.broadcast %cst_12 : f32 to vector<16x256xf32>
    %22 = arith.divf %21, %20 : vector<16x256xf32>
    %cst_13 = arith.constant 1.06140542 : f32
    %23 = vector.broadcast %cst_13 : f32 to vector<16x256xf32>
    %24 = arith.mulf %23, %22 : vector<16x256xf32>
    %cst_14 = arith.constant -1.45315206 : f32
    %25 = vector.broadcast %cst_14 : f32 to vector<16x256xf32>
    %26 = arith.addf %24, %25 : vector<16x256xf32>
    %27 = arith.mulf %26, %22 : vector<16x256xf32>
    %cst_15 = arith.constant 1.42141378 : f32
    %28 = vector.broadcast %cst_15 : f32 to vector<16x256xf32>
    %29 = arith.addf %27, %28 : vector<16x256xf32>
    %30 = arith.mulf %29, %22 : vector<16x256xf32>
    %cst_16 = arith.constant -0.284496725 : f32
    %31 = vector.broadcast %cst_16 : f32 to vector<16x256xf32>
    %32 = arith.addf %30, %31 : vector<16x256xf32>
    %33 = arith.mulf %32, %22 : vector<16x256xf32>
    %cst_17 = arith.constant 0.254829586 : f32
    %34 = vector.broadcast %cst_17 : f32 to vector<16x256xf32>
    %35 = arith.addf %33, %34 : vector<16x256xf32>
    %36 = arith.mulf %35, %22 : vector<16x256xf32>
    %cst_18 = arith.constant 0.000000e+00 : f32
    %37 = vector.broadcast %cst_18 : f32 to vector<16x256xf32>
    %38 = arith.subf %37, %16 : vector<16x256xf32>
    %39 = arith.mulf %38, %16 : vector<16x256xf32>
    %40 = math.exp %39 : vector<16x256xf32>
    %41 = arith.mulf %36, %40 : vector<16x256xf32>
    %cst_19 = arith.constant 1.000000e+00 : f32
    %42 = vector.broadcast %cst_19 : f32 to vector<16x256xf32>
    %43 = arith.subf %42, %41 : vector<16x256xf32>
    %44 = arith.mulf %15, %43 : vector<16x256xf32>
    %cst_20 = arith.constant 1.000000e+00 : f32
    %45 = vector.broadcast %cst_20 : f32 to vector<16x256xf32>
    %46 = arith.addf %45, %44 : vector<16x256xf32>
    %47 = arith.mulf %8, %46 : vector<16x256xf32>
    %48 = arith.truncf %47 : vector<16x256xf32> to vector<16x256xbf16>
    %c0_21 = arith.constant 0 : index
    %c0_22 = arith.constant 0 : index
    %49 = vector.load %arg4[%c0_21, %c0_22] : memref<256x128xbf16, #tpu.memory_space<vmem>>, vector<256x128xbf16>
    %cst_23 = arith.constant dense<0.000000e+00> : vector<16x128xf32>
    %50 = tpu.matmul %48, %49, %cst_23 {dimension_numbers = #tpu.dot_dimension_numbers<[1], [0], [0], [1], [0, 0, 1, 1], [], []>} : vector<16x256xbf16>, vector<256x128xbf16>, vector<16x128xf32> -> vector<16x128xf32>
    %c0_24 = arith.constant 0 : index
    %c0_25 = arith.constant 0 : index
    %51 = vector.load %arg5[%c0_24, %c0_25] : memref<1x128xf32, #tpu.memory_space<vmem>>, vector<1x128xf32>
    %52 = vector.broadcast %51 : vector<1x128xf32> to vector<16x128xf32>
    %53 = arith.addf %50, %52 : vector<16x128xf32>
    %54 = arith.addf %53, %0 : vector<16x128xf32>
    %c0_26 = arith.constant 0 : index
    %c0_27 = arith.constant 0 : index
    %55 = vector.load %arg6[%c0_26, %c0_27] : memref<1x128xf32, #tpu.memory_space<vmem>>, vector<1x128xf32>
    %c0_28 = arith.constant 0 : index
    %c0_29 = arith.constant 0 : index
    %56 = vector.load %arg7[%c0_28, %c0_29] : memref<1x128xf32, #tpu.memory_space<vmem>>, vector<1x128xf32>
    %cst_30 = arith.constant dense<0.000000e+00> : vector<16xf32>
    %57 = vector.multi_reduction <add>, %54, %cst_30 [1] : vector<16x128xf32> to vector<16xf32>
    %58 = vector.shape_cast %57 : vector<16xf32> to vector<16x1xf32>
    %cst_31 = arith.constant 1.280000e+02 : f32
    %59 = vector.broadcast %cst_31 : f32 to vector<16x1xf32>
    %60 = arith.divf %58, %59 : vector<16x1xf32>
    %61 = vector.broadcast %60 : vector<16x1xf32> to vector<16x128xf32>
    %62 = arith.subf %54, %61 : vector<16x128xf32>
    %63 = arith.mulf %62, %62 : vector<16x128xf32>
    %cst_32 = arith.constant dense<0.000000e+00> : vector<16xf32>
    %64 = vector.multi_reduction <add>, %63, %cst_32 [1] : vector<16x128xf32> to vector<16xf32>
    %65 = vector.shape_cast %64 : vector<16xf32> to vector<16x1xf32>
    %cst_33 = arith.constant 1.280000e+02 : f32
    %66 = vector.broadcast %cst_33 : f32 to vector<16x1xf32>
    %67 = arith.divf %65, %66 : vector<16x1xf32>
    %cst_34 = arith.constant 9.99999996E-13 : f32
    %68 = vector.broadcast %cst_34 : f32 to vector<16x1xf32>
    %69 = arith.addf %67, %68 : vector<16x1xf32>
    %70 = math.rsqrt %69 : vector<16x1xf32>
    %71 = vector.broadcast %70 : vector<16x1xf32> to vector<16x128xf32>
    %72 = arith.mulf %62, %71 : vector<16x128xf32>
    %73 = vector.broadcast %55 : vector<1x128xf32> to vector<16x128xf32>
    %74 = arith.mulf %72, %73 : vector<16x128xf32>
    %75 = vector.broadcast %56 : vector<1x128xf32> to vector<16x128xf32>
    %76 = arith.addf %74, %75 : vector<16x128xf32>
    %c0_35 = arith.constant 0 : index
    %c0_36 = arith.constant 0 : index
    %77 = vector.load %arg8[%c0_35, %c0_36] : memref<16x128xf32, #tpu.memory_space<vmem>>, vector<16x128xf32>
    tpu.vector_store %arg8[%c0_35, %c0_36], %76 {strides = array<i32>} : memref<16x128xf32, #tpu.memory_space<vmem>>, vector<16x128xf32>,
    return
  }
  func.func @transform_0(%arg0: i32) -> (i32, i32) {
    %c0_i32 = arith.constant 0 : i32
    %c0_i32_0 = arith.constant 0 : i32
    return %arg0, %c0_i32 : i32, i32
  }
  func.func @transform_1(%arg0: i32) -> (i32, i32) {
    %c0_i32 = arith.constant 0 : i32
    %c0_i32_0 = arith.constant 0 : i32
    %c0_i32_1 = arith.constant 0 : i32
    return %c0_i32, %c0_i32_0 : i32, i32
  }
  func.func @transform_2(%arg0: i32) -> (i32, i32) {
    %c0_i32 = arith.constant 0 : i32
    %c0_i32_0 = arith.constant 0 : i32
    %c0_i32_1 = arith.constant 0 : i32
    return %c0_i32, %c0_i32_0 : i32, i32
  }
  func.func @transform_3(%arg0: i32) -> (i32, i32) {
    %c0_i32 = arith.constant 0 : i32
    %c0_i32_0 = arith.constant 0 : i32
    %c0_i32_1 = arith.constant 0 : i32
    return %c0_i32, %c0_i32_0 : i32, i32
  }
  func.func @transform_4(%arg0: i32) -> (i32, i32) {
    %c0_i32 = arith.constant 0 : i32
    %c0_i32_0 = arith.constant 0 : i32
    %c0_i32_1 = arith.constant 0 : i32
    return %c0_i32, %c0_i32_0 : i32, i32
  }
  func.func @transform_5(%arg0: i32) -> (i32, i32) {
    %c0_i32 = arith.constant 0 : i32
    %c0_i32_0 = arith.constant 0 : i32
    %c0_i32_1 = arith.constant 0 : i32
    return %c0_i32, %c0_i32_0 : i32, i32
  }
  func.func @transform_6(%arg0: i32) -> (i32, i32) {
    %c0_i32 = arith.constant 0 : i32
    %c0_i32_0 = arith.constant 0 : i32
    %c0_i32_1 = arith.constant 0 : i32
    return %c0_i32, %c0_i32_0 : i32, i32
  }
  func.func @transform_7(%arg0: i32) -> (i32, i32) {
    %c0_i32 = arith.constant 0 : i32
    %c0_i32_0 = arith.constant 0 : i32
    return %arg0, %c0_i32 : i32, i32
  }
}

module attributes {stable_mosaic.version = 11 : i64} {
  func.func @_pool_head_kernel(%arg0: memref<2x8x128xf32, #tpu.memory_space<vmem>>, %arg1: memref<128x1xf32, #tpu.memory_space<vmem>>, %arg2: memref<1x1xf32, #tpu.memory_space<vmem>>, %arg3: memref<2x1xf32, #tpu.memory_space<vmem>>) attributes {dimension_semantics = [], scalar_prefetch = 0 : i64, scratch_operands = 0 : i64, tpu.core_type = #tpu.core_type<tc>} {
    %c0 = arith.constant 0 : index
    %c0_0 = arith.constant 0 : index
    %c0_1 = arith.constant 0 : index
    %0 = vector.load %arg0[%c0, %c0_0, %c0_1] : memref<2x8x128xf32, #tpu.memory_space<vmem>>, vector<2x8x128xf32>
    %cst = arith.constant dense<0.000000e+00> : vector<2x128xf32>
    %1 = vector.multi_reduction <add>, %0, %cst [1] : vector<2x8x128xf32> to vector<2x128xf32>
    %cst_2 = arith.constant 8.000000e+00 : f32
    %2 = vector.broadcast %cst_2 : f32 to vector<2x128xf32>
    %3 = arith.divf %1, %2 : vector<2x128xf32>
    %c0_3 = arith.constant 0 : index
    %c0_4 = arith.constant 0 : index
    %4 = vector.load %arg1[%c0_3, %c0_4] : memref<128x1xf32, #tpu.memory_space<vmem>>, vector<128x1xf32>
    %cst_5 = arith.constant dense<0.000000e+00> : vector<2x1xf32>
    %5 = tpu.matmul %3, %4, %cst_5 {dimension_numbers = #tpu.dot_dimension_numbers<[1], [0], [0], [1], [0, 0, 1, 1], [], []>} : vector<2x128xf32>, vector<128x1xf32>, vector<2x1xf32> -> vector<2x1xf32>
    %c0_6 = arith.constant 0 : index
    %c0_7 = arith.constant 0 : index
    %6 = vector.load %arg2[%c0_6, %c0_7] : memref<1x1xf32, #tpu.memory_space<vmem>>, vector<1x1xf32>
    %7 = vector.broadcast %6 : vector<1x1xf32> to vector<2x1xf32>
    %8 = arith.addf %5, %7 : vector<2x1xf32>
    %9 = arith.negf %8 : vector<2x1xf32>
    %10 = math.exp %9 : vector<2x1xf32>
    %cst_8 = arith.constant 1.000000e+00 : f32
    %11 = vector.broadcast %cst_8 : f32 to vector<2x1xf32>
    %12 = arith.addf %11, %10 : vector<2x1xf32>
    %13 = arith.divf %11, %12 : vector<2x1xf32>
    %c0_9 = arith.constant 0 : index
    %c0_10 = arith.constant 0 : index
    %14 = vector.load %arg3[%c0_9, %c0_10] : memref<2x1xf32, #tpu.memory_space<vmem>>, vector<2x1xf32>
    tpu.vector_store %arg3[%c0_9, %c0_10], %13 {strides = array<i32>} : memref<2x1xf32, #tpu.memory_space<vmem>>, vector<2x1xf32>,
    return
  }
}

</mosaic_0001>

<bundles_post_ra>
// kernel: xlnet_class_l1_forward.9
= control target key start
LH: loop header
LB: loop body
LE: loop exit
PB: predicated region body
PF: predicated region fallthrough
CT: control target
= control target key end

     0   :  { %v228_v0 = vmov 0.0|0.0   ;;  %vm229_vm0 = vmmov 0   ;;  %v230_v4 = vmov 0.0   ;;  %vm58_vm1 = vcmask 1041409   ;;  %s311_s1 = inlined_call_operand.vmem [shape: f32[128,1], index: 1, kind: input, shape index: {}]   ;;  %s312_s2 = inlined_call_operand.<no memory space> [shape: f32[1,1], index: 2, kind: input, shape index: {}]   ;;  %s313_s0 = inlined_call_operand.vmem [shape: f32[2,8,128], index: 0, kind: input, shape index: {}]   ;;  %s314_s3 = inlined_call_operand.vmem [shape: f32[2,1], index: 3, kind: output, shape index: {}]  }
   0x1   :  { %197 = vmatprep.subr.bf16.mxu0 %v228_v0  ;;  %v33_v1 = vld [vmem:[%s311_s1] sm:$0xff]  ;;  %v34_v2 = vld [vmem:[%s311_s1 + $0x8] sm:$0xff]  ;;  %v35_v3 = vld [vmem:[%s311_s1 + $0x10] sm:$0xff]  ;;  %194 = vmatprep.mubr.msk.f32.mxu0 %vm229_vm0, %v230_v4  ;;  %v8_v5 = vstv %s312_s2  ;;  %vm137_vm2 = vcmask 1024  }
   0x2   :  { %v198_v6 = vpack.c.bf16 %v34_v2, %v33_v1  ;;  %v36_v7 = vld [vmem:[%s311_s1 + $0x18] sm:$0xff]  ;;  %9 = vst [vmem:[#allocation2] sm:$0x1] %v8_v5  ;;  %v37_v9 = vld [vmem:[%s311_s1 + $0x20] sm:$0xff]  ;;  %v38_v10 = vld [vmem:[%s311_s1 + $0x28] sm:$0xff] }
   0x3   :  { %v201_v8 = vpack.c.bf16 %v36_v7, %v35_v3  ;;  %v16_v11 = vld [vmem:[%s313_s0] sm:$0xff]  ;;  %v17_v12 = vld [vmem:[%s313_s0 + $0x8] sm:$0xff]  ;;  %v204_v15 = vpack.c.bf16 %v38_v10, %v37_v9  ;;  %v39_v16 = vld [vmem:[%s311_s1 + $0x30] sm:$0xff] }
   0x4   :  { %199 = vmatpush3.bf16.msra.mxu0 %v198_v6  ;;  %v18_v13 = vrot.slane %v16_v11, 4  ;;  %v24_v14 = vrot.slane %v17_v12, 4  ;;  %v40_v17 = vld [vmem:[%s311_s1 + $0x38] sm:$0xff]  ;;  %v41_v23 = vld [vmem:[%s311_s1 + $0x40] sm:$0xff]  ;;  %v42_v24 = vld [vmem:[%s311_s1 + $0x48] sm:$0xff] }
   0x5   :  { %200 = vmatprep.subr.bf16.mxu0 %v228_v0  ;;  %v207_v20 = vpack.c.bf16 %v40_v17, %v39_v16  ;;  %v210_v25 = vpack.c.bf16 %v42_v24, %v41_v23  ;;  %v43_v28 = vld [vmem:[%s311_s1 + $0x50] sm:$0xff]  ;;  %v44_v29 = vld [vmem:[%s311_s1 + $0x58] sm:$0xff]  ;;  %v45_v33 = vld [vmem:[%s311_s1 + $0x60] sm:$0xff] }
   0x6   :  { %v19_v18 = vadd.f32 %v18_v13, %v16_v11  ;;  %v25_v19 = vadd.f32 %v24_v14, %v17_v12  ;;  %v213_v30 = vpack.c.bf16 %v44_v29, %v43_v28  ;;  %v46_v34 = vld [vmem:[%s311_s1 + $0x68] sm:$0xff]  ;;  %v47_v38 = vld [vmem:[%s311_s1 + $0x70] sm:$0xff]  ;;  %v48_v39 = vld [vmem:[%s311_s1 + $0x78] sm:$0xff] }
   0x7   :  { %v216_v35 = vpack.c.bf16 %v46_v34, %v45_v33  ;;  %v219_v40 = vpack.c.bf16 %v48_v39, %v47_v38 }
   0x8   :  { %202 = vmatpush3.bf16.msra.mxu0 %v201_v8  ;;  %v20_v21 = vrot.slane %v19_v18, 2  ;;  %v26_v22 = vrot.slane %v25_v19, 2 }
   0x9   :  { %203 = vmatprep.subr.bf16.mxu0 %v228_v0  ;;  %v143_v44 = vld [vmem:[#allocation2] ss:$0 sm:$0xff] }
   0xa   :  { %v21_v26 = vadd.f32 %v20_v21, %v19_v18  ;;  %v27_v27 = vadd.f32 %v26_v22, %v25_v19 }
   0xc   :  { %205 = vmatpush3.bf16.msra.mxu0 %v204_v15  ;;  %v22_v31 = vrot.slane %v21_v26, 1  ;;  %v28_v32 = vrot.slane %v27_v27, 1 }
   0xd   :  { %206 = vmatprep.subr.bf16.mxu0 %v228_v0 }
   0xe   :  { %v23_v36 = vadd.f32 %v22_v31, %v21_v26  ;;  %v29_v37 = vadd.f32 %v28_v32, %v27_v27 }
  0x10   :  { %208 = vmatpush3.bf16.msra.mxu0 %v207_v20  ;;  %v31_v41 = vmul.f32 0.125, %v23_v36  ;;  %v32_v42 = vmul.f32 0.125, %v29_v37 }
  0x11   :  { %209 = vmatprep.subr.bf16.mxu0 %v228_v0 }
  0x12   :  { %v59_v43 = vsel %vm58_vm1, %v32_v42, %v31_v41 }
  0x14   :  { %211 = vmatpush3.bf16.msra.mxu0 %v210_v25 }
  0x15   :  { %212 = vmatprep.subr.bf16.mxu0 %v228_v0 }
  0x18   :  { %214 = vmatpush3.bf16.msra.mxu0 %v213_v30 }
  0x19   :  { %215 = vmatprep.subr.bf16.mxu0 %v228_v0 }
  0x1c   :  { %217 = vmatpush3.bf16.msra.mxu0 %v216_v35 }
  0x1d   :  { %218 = vmatprep.subr.bf16.mxu0 %v228_v0 }
  0x20   :  { %220 = vmatpush3.bf16.msra.mxu0 %v219_v40 }
  0x23   :  { %195 = vmatmul.mubr.f32.vlgmr.msra.gmra.mrb[0].mxu0 %v59_v43 }
  0xf6   :  { %v127_v45 = vpop.f32.mrb[0].mxu0 }
  0xf7   :  { %v128_v46 = vadd.f32 %v143_v44, %v127_v45  ;;  %v196_v47 = vpop.f32.mrb[1].mxu0 }
  0xf9   :  { %v144_v48 = vmul.f32 -1.442695, %v128_v46 }
  0xfb   :  { %224 = vpow2.f32 %v144_v48 }
 0x105   :  { %v225_v49 = vpop.eup %224 }
 0x106   :  { %v134_v50 = vadd.f32 1.0, %v225_v49 }
 0x108   :  { %226 = vrcp.f32 %v134_v50 }
 0x112   :  { %v227_v51 = vpop.eup %226 }
 0x113   :  { %138 = vst.msk [vmem:[%s314_s3] sm:$0x3] %vm137_vm2, %v227_v51 }

// kernel: xlnet_class_l1_forward.6
= control target key start
LH: loop header
LB: loop body
LE: loop exit
PB: predicated region body
PF: predicated region fallthrough
CT: control target
= control target key end

     0   :  { %v635_v1 = vmov 0   ;;  %v48_v36 = vlaneseq  ;;  %s837_s1 = inlined_call_operand.vmem [shape: bf16[128,256], index: 1, kind: input, shape index: {}]   ;;  %s838_s0 = inlined_call_operand.vmem [shape: f32[16,128], index: 0, kind: input, shape index: {}]   ;;  %s839_s3 = inlined_call_operand.vmem [shape: bf16[256,128], index: 3, kind: input, shape index: {}]   ;;  %s840_s2 = inlined_call_operand.vmem [shape: f32[1,256], index: 2, kind: input, shape index: {}]   ;;  %s841_s4 = inlined_call_operand.vmem [shape: f32[1,128], index: 4, kind: input, shape index: {}]   ;;  %s842_s5 = inlined_call_operand.vmem [shape: f32[1,128], index: 5, kind: input, shape index: {}]   ;;  %s843_s6 = inlined_call_operand.vmem [shape: f32[1,128], index: 6, kind: input, shape index: {}]   ;;  %s844_s7 = inlined_call_operand.vmem [shape: f32[16,128], index: 7, kind: output, shape index: {}]  }
   0x1   :  { %v575_v0 = vld [vmem:[%s837_s1 + $0x4] ss:$8 sps:$4 sm:$0xff]   ;;  %170 = vmatprep.mubr.bf16.mxu0 %v635_v1  ;;  %v577_v2 = vld [vmem:[%s837_s1] ss:$8 sps:$4 sm:$0xff]   ;;  %v578_v3 = vld [vmem:[%s837_s1 + $0x14] ss:$8 sps:$4 sm:$0xff]  }
   0x2   :  { %138 = vmatprep.subr.bf16.mxu0 %v575_v0  ;;  %v580_v4 = vld [vmem:[%s837_s1 + $0x10] ss:$8 sps:$4 sm:$0xff]   ;;  %v581_v5 = vld [vmem:[%s837_s1 + $0x24] ss:$8 sps:$4 sm:$0xff]   ;;  %v583_v6 = vld [vmem:[%s837_s1 + $0x20] ss:$8 sps:$4 sm:$0xff]  }
   0x3   :  { %139 = vmatpush1.bf16.msra.mxu0 %v577_v2  ;;  %v584_v7 = vld [vmem:[%s837_s1 + $0x34] ss:$8 sps:$4 sm:$0xff]   ;;  %v586_v8 = vld [vmem:[%s837_s1 + $0x30] ss:$8 sps:$4 sm:$0xff]   ;;  %v587_v9 = vld [vmem:[%s837_s1 + $0x44] ss:$8 sps:$4 sm:$0xff]  }
   0x4   :  { %140 = vmatprep.subr.bf16.mxu0 %v578_v3  ;;  %v589_v10 = vld [vmem:[%s837_s1 + $0x40] ss:$8 sps:$4 sm:$0xff]   ;;  %v590_v11 = vld [vmem:[%s837_s1 + $0x54] ss:$8 sps:$4 sm:$0xff]   ;;  %v592_v12 = vld [vmem:[%s837_s1 + $0x50] ss:$8 sps:$4 sm:$0xff]  }
   0x5   :  { %v593_v13 = vld [vmem:[%s837_s1 + $0x64] ss:$8 sps:$4 sm:$0xff]   ;;  %v595_v14 = vld [vmem:[%s837_s1 + $0x60] ss:$8 sps:$4 sm:$0xff]   ;;  %v596_v15 = vld [vmem:[%s837_s1 + $0x74] ss:$8 sps:$4 sm:$0xff]  }
   0x6   :  { %v598_v16 = vld [vmem:[%s837_s1 + $0x70] ss:$8 sps:$4 sm:$0xff]   ;;  %v728_v17 = vld [vmem:[%s838_s0] sm:$0xff]  ;;  %v733_v18 = vld [vmem:[%s838_s0 + $0x8] sm:$0xff]  ;;  %v49_v37 = vshrl.u32 %v48_v36, 7 }
   0x7   :  { %141 = vmatpush1.bf16.msra.mxu0 %v580_v4  ;;  %v29_v19 = vpack.c.bf16 %v733_v18, %v728_v17  ;;  %v599_v20 = vld [vmem:[%s839_s3 + $0x40] sm:$0xff]   ;;  %v601_v22 = vld [vmem:[%s839_s3 + $0x48] sm:$0xff]   ;;  %v603_v24 = vld [vmem:[%s839_s3 + $0x50] sm:$0xff]  }
   0x8   :  { %142 = vmatprep.subr.bf16.mxu0 %v581_v5  ;;  %v600_v21 = vld [vmem:[%s839_s3] sm:$0xff]   ;;  %551 = vmatprep.subr.bf16.mxu1 %v599_v20  ;;  %v602_v23 = vld [vmem:[%s839_s3 + $0x8] sm:$0xff]   ;;  %v604_v25 = vld [vmem:[%s839_s3 + $0x10] sm:$0xff]   ;;  %v50_v38 = vsub.s32 0, %v49_v37  ;;  %v54_v40 = vsub.s32 1, %v49_v37 }
   0x9   :  { %552 = vmatpush3.bf16.msra.mxu1 %v600_v21  ;;  %v605_v26 = vld [vmem:[%s839_s3 + $0x58] sm:$0xff]   ;;  %v607_v28 = vld [vmem:[%s839_s3 + $0x60] sm:$0xff]   ;;  %v609_v30 = vld [vmem:[%s839_s3 + $0x68] sm:$0xff]  }
   0xa   :  { %553 = vmatprep.subr.bf16.mxu1 %v601_v22  ;;  %v606_v27 = vld [vmem:[%s839_s3 + $0x18] sm:$0xff]   ;;  %v608_v29 = vld [vmem:[%s839_s3 + $0x20] sm:$0xff]   ;;  %v610_v31 = vld [vmem:[%s839_s3 + $0x28] sm:$0xff]  }
   0xb   :  { %143 = vmatpush1.bf16.msra.mxu0 %v583_v6  ;;  %v611_v32 = vld [vmem:[%s839_s3 + $0x70] sm:$0xff]   ;;  %v613_v34 = vld [vmem:[%s839_s3 + $0x78] sm:$0xff]   ;;  %v46_v39 = vld [vmem:[%s840_s2] sm:$0x3] }
   0xc   :  { %144 = vmatprep.subr.bf16.mxu0 %v584_v7  ;;  %v612_v33 = vld [vmem:[%s839_s3 + $0x30] sm:$0xff]   ;;  %v614_v35 = vld [vmem:[%s839_s3 + $0x38] sm:$0xff]   ;;  %v51_v41 = vrot.slane %v46_v39, %v50_v38  ;;  %v55_v42 = vrot.slane %v46_v39, %v54_v40 }
   0xd   :  { %554 = vmatpush3.bf16.msra.mxu1 %v602_v23 }
   0xe   :  { %555 = vmatprep.subr.bf16.mxu1 %v603_v24 }
   0xf   :  { %145 = vmatpush1.bf16.msra.mxu0 %v586_v8 }
  0x10   :  { %146 = vmatprep.subr.bf16.mxu0 %v587_v9 }
  0x11   :  { %556 = vmatpush3.bf16.msra.mxu1 %v604_v25 }
  0x12   :  { %557 = vmatprep.subr.bf16.mxu1 %v605_v26 }
  0x13   :  { %147 = vmatpush1.bf16.msra.mxu0 %v589_v10 }
  0x14   :  { %148 = vmatprep.subr.bf16.mxu0 %v590_v11 }
  0x15   :  { %558 = vmatpush3.bf16.msra.mxu1 %v606_v27 }
  0x16   :  { %559 = vmatprep.subr.bf16.mxu1 %v607_v28 }
  0x17   :  { %149 = vmatpush1.bf16.msra.mxu0 %v592_v12 }
  0x18   :  { %150 = vmatprep.subr.bf16.mxu0 %v593_v13 }
  0x19   :  { %560 = vmatpush3.bf16.msra.mxu1 %v608_v29 }
  0x1a   :  { %561 = vmatprep.subr.bf16.mxu1 %v609_v30 }
  0x1b   :  { %151 = vmatpush1.bf16.msra.mxu0 %v595_v14 }
  0x1c   :  { %152 = vmatprep.subr.bf16.mxu0 %v596_v15 }
  0x1d   :  { %562 = vmatpush3.bf16.msra.mxu1 %v610_v31 }
  0x1e   :  { %563 = vmatprep.subr.bf16.mxu1 %v611_v32 }
  0x1f   :  { %153 = vmatpush1.bf16.msra.mxu0 %v598_v16 }
  0x21   :  { %564 = vmatpush3.bf16.msra.mxu1 %v612_v33 }
  0x22   :  { %171 = vmatmul.mubr.bf16.vlgmr.msra.gmra.mrb[0].mxu0 %v29_v19  ;;  %565 = vmatprep.subr.bf16.mxu1 %v613_v34 }
  0x25   :  { %566 = vmatpush3.bf16.msra.mxu1 %v614_v35 }
  0xf5   :  { %v172_v43 = vpop.f32.mrb[0].mxu0 }
  0xf6   :  { %v788_v44 = vadd.f32 %v172_v43, %v51_v41  ;;  %v174_v45 = vpop.f32.mrb[1].mxu0 }
  0xf7   :  { %v790_v46 = vadd.f32 %v174_v45, %v55_v42  ;;  %v176_v47 = vpop.f32.mrb[2].mxu0 }
  0xf8   :  { %v793_v48 = vmul.f32 0.70710677, %v788_v44  ;;  %v795_v49 = vadd.f32 %v176_v47, %v51_v41  ;;  %v178_v50 = vpop.f32.mrb[3].mxu0 }
  0xf9   :  { %v798_v51 = vmul.f32 0.70710677, %v790_v46  ;;  %v800_v52 = vadd.f32 %v178_v50, %v55_v42 }
  0xfa   :  { %v197_v53 = vand.u32 2147483647, %v793_v48  ;;  %v804_v54 = vmul.f32 0.70710677, %v795_v49  ;;  %vm189_vm0 = vcmp.lt.f32.partialorder %v793_v48, 0.0 }
  0xfb   :  { %v198_v55 = vand.u32 2147483647, %v798_v51  ;;  %v809_v59 = vmul.f32 0.70710677, %v800_v52  ;;  %vm190_vm1 = vcmp.lt.f32.partialorder %v798_v51, 0.0 }
  0xfc   :  { %v201_v56 = vmul.f32 0.3275911, %v197_v53  ;;  %v199_v57 = vand.u32 2147483647, %v804_v54  ;;  %v253_v3 = vsub.f32 0.0, %v197_v53  ;;  %vm191_vm2 = vcmp.lt.f32.partialorder %v804_v54, 0.0 }
  0xfd   :  { %v202_v58 = vmul.f32 0.3275911, %v198_v55  ;;  %v200_v63 = vand.u32 2147483647, %v809_v59  ;;  %v254_v4 = vsub.f32 0.0, %v198_v55  ;;  %vm192_vm3 = vcmp.lt.f32.partialorder %v809_v59, 0.0 }
  0xfe   :  { %v205_v60 = vadd.f32 1.0, %v201_v56  ;;  %v203_v61 = vmul.f32 0.3275911, %v199_v57  ;;  %v257_v6 = vmul.f32 %v253_v3, %v197_v53  ;;  %v255_v7 = vsub.f32 0.0, %v199_v57 }
  0xff   :  { %v206_v62 = vadd.f32 1.0, %v202_v58  ;;  %v204_v1 = vmul.f32 0.3275911, %v200_v63  ;;  %v258_v10 = vmul.f32 %v254_v4, %v198_v55  ;;  %v256_v11 = vsub.f32 0.0, %v200_v63 }
 0x100   :  { %615 = vrcp.f32 %v205_v60  ;;  %v207_v0 = vadd.f32 1.0, %v203_v61  ;;  %v261_v15 = vmul.f32 1.442695, %v257_v6  ;;  %v259_v16 = vmul.f32 %v255_v7, %v199_v57 }
 0x101   :  { %617 = vrcp.f32 %v206_v62  ;;  %v208_v2 = vadd.f32 1.0, %v204_v1  ;;  %v263_v21 = vmul.f32 1.442695, %v258_v10  ;;  %v260_v24 = vmul.f32 %v256_v11, %v200_v63 }
 0x102   :  { %619 = vrcp.f32 %v207_v0  ;;  %v265_v29 = vmul.f32 1.442695, %v259_v16  ;;  %v636_v7 = vmov 1.0   ;;  %v184_v59 = vmul.f32 0.5, %v800_v52 }
 0x103   :  { %621 = vrcp.f32 %v208_v2  ;;  %v267_v34 = vmul.f32 1.442695, %v260_v24  ;;  %v194_v48 = vsel %vm190_vm1, -1.0, %v636_v7  ;;  %v183_v24 = vmul.f32 0.5, %v795_v49  ;;  %v532_v49 = vld [vmem:[%s841_s4] ss:$0 sm:$0xff] }
 0x104   :  { %623 = vpow2.f32 %v261_v15 }
 0x105   :  { %625 = vpow2.f32 %v263_v21  ;;  %v181_v21 = vmul.f32 0.5, %v788_v44 }
 0x106   :  { %627 = vpow2.f32 %v265_v29 }
 0x107   :  { %629 = vpow2.f32 %v267_v34 }
 0x10a   :  { %v616_v5 = vpop.eup %615 }
 0x10b   :  { %v618_v8 = vpop.eup %617  ;;  %v217_v9 = vmul.f32 1.0614054, %v616_v5 }
 0x10c   :  { %v218_v12 = vmul.f32 1.0614054, %v618_v8  ;;  %v620_v14 = vpop.eup %619 }
 0x10d   :  { %v221_v13 = vadd.f32 -1.4531521, %v217_v9  ;;  %v219_v22 = vmul.f32 1.0614054, %v620_v14  ;;  %v622_v23 = vpop.eup %621  ;;  %v193_v9 = vsel %vm189_vm0, -1.0, %v636_v7 }
 0x10e   :  { %v222_v19 = vadd.f32 -1.4531521, %v218_v12  ;;  %v220_v28 = vmul.f32 1.0614054, %v622_v23  ;;  %v624_v58 = vpop.eup %623 }
 0x10f   :  { %v225_v20 = vmul.f32 %v616_v5, %v221_v13  ;;  %v223_v27 = vadd.f32 -1.4531521, %v219_v22  ;;  %v626_v61 = vpop.eup %625  ;;  %v196_v22 = vsel %vm192_vm3, -1.0, %v636_v7 }
 0x110   :  { %v226_v25 = vmul.f32 %v618_v8, %v222_v19  ;;  %v224_v33 = vadd.f32 -1.4531521, %v220_v28  ;;  %v628_v6 = vpop.eup %627  ;;  %v195_v19 = vsel %vm191_vm2, -1.0, %v636_v7 }
 0x111   :  { %v229_v26 = vadd.f32 1.4214138, %v225_v20  ;;  %v227_v32 = vmul.f32 %v620_v14, %v223_v27  ;;  %v630_v12 = vpop.eup %629 }
 0x112   :  { %v230_v30 = vadd.f32 1.4214138, %v226_v25  ;;  %v228_v38 = vmul.f32 %v622_v23, %v224_v33 }
 0x113   :  { %v233_v31 = vmul.f32 %v616_v5, %v229_v26  ;;  %v231_v37 = vadd.f32 1.4214138, %v227_v32 }
 0x114   :  { %v234_v35 = vmul.f32 %v618_v8, %v230_v30  ;;  %v232_v42 = vadd.f32 1.4214138, %v228_v38 }
 0x115   :  { %v237_v36 = vadd.f32 -0.28449672, %v233_v31  ;;  %v235_v41 = vmul.f32 %v620_v14, %v231_v37 }
 0x116   :  { %v238_v39 = vadd.f32 -0.28449672, %v234_v35  ;;  %v236_v50 = vmul.f32 %v622_v23, %v232_v42 }
 0x117   :  { %v241_v40 = vmul.f32 %v616_v5, %v237_v36  ;;  %v239_v47 = vadd.f32 -0.28449672, %v235_v41 }
 0x118   :  { %v242_v43 = vmul.f32 %v618_v8, %v238_v39  ;;  %v240_v57 = vadd.f32 -0.28449672, %v236_v50 }
 0x119   :  { %v245_v45 = vadd.f32 0.2548296, %v241_v40  ;;  %v243_v56 = vmul.f32 %v620_v14, %v239_v47 }
 0x11a   :  { %v246_v53 = vadd.f32 0.2548296, %v242_v43  ;;  %v244_v0 = vmul.f32 %v622_v23, %v240_v57 }
 0x11b   :  { %v249_v55 = vmul.f32 %v616_v5, %v245_v45  ;;  %v247_v63 = vadd.f32 0.2548296, %v243_v56 }
 0x11c   :  { %v250_v60 = vmul.f32 %v618_v8, %v246_v53  ;;  %v248_v4 = vadd.f32 0.2548296, %v244_v0  ;;  %v550_v0 = vld [vmem:[%s843_s6] ss:$0 sm:$0xff] }
 0x11d   :  { %v269_v62 = vmul.f32 %v624_v58, %v249_v55  ;;  %v251_v3 = vmul.f32 %v620_v14, %v247_v63 }
 0x11e   :  { %v270_v1 = vmul.f32 %v626_v61, %v250_v60  ;;  %v252_v11 = vmul.f32 %v622_v23, %v248_v4  ;;  %v182_v23 = vmul.f32 0.5, %v790_v46 }
 0x11f   :  { %v273_v2 = vsub.f32 1.0, %v269_v62  ;;  %v271_v8 = vmul.f32 %v628_v6, %v251_v3  ;;  %v549_v62 = vld [vmem:[%s842_s5] ss:$0 sm:$0xff] }
 0x120   :  { %v274_v5 = vsub.f32 1.0, %v270_v1  ;;  %v272_v15 = vmul.f32 %v630_v12, %v252_v11 }
 0x121   :  { %v277_v10 = vmul.f32 %v273_v2, %v193_v9  ;;  %v275_v13 = vsub.f32 1.0, %v271_v8 }
 0x122   :  { %v278_v16 = vmul.f32 %v274_v5, %v194_v48  ;;  %v276_v20 = vsub.f32 1.0, %v272_v15 }
 0x123   :  { %v281_v51 = vadd.f32 1.0, %v277_v10  ;;  %v279_v14 = vmul.f32 %v275_v13, %v195_v19 }
 0x124   :  { %v280_v54 = vmul.f32 %v276_v20, %v196_v22  ;;  %v282_v26 = vadd.f32 1.0, %v278_v16 }
 0x125   :  { %v283_v25 = vadd.f32 1.0, %v279_v14  ;;  %v285_v27 = vmul.f32 %v281_v51, %v181_v21 }
 0x126   :  { %v284_v29 = vadd.f32 1.0, %v280_v54  ;;  %v286_v30 = vmul.f32 %v282_v26, %v182_v23 }
 0x127   :  { %v287_v28 = vmul.f32 %v283_v25, %v183_v24 }
 0x128   :  { %v288_v31 = vmul.f32 %v284_v29, %v184_v59 }
 0x129   :  { %v289_v32 = vpack.c.bf16 %v287_v28, %v285_v27 }
 0x12a   :  { %v290_v33 = vpack.c.bf16 %v288_v31, %v286_v30 }
 0x12c   :  { %458 = vmatprep.mubr.bf16.mxu1 %v290_v33 }
 0x12d   :  { %459 = vmatmul.mubr.bf16.vlgmr.msra.gmra.mrb[0].mxu1 %v289_v32 }
 0x200   :  { %v567_v44 = vpop.f32.mrb[0].mxu1 }
 0x201   :  { %v568_v34 = vpop.f32.mrb[1].mxu1 }
 0x202   :  { %v569_v35 = vadd.f32 %v568_v34, %v567_v44  ;;  %v570_v36 = vpop.f32.mrb[2].mxu1 }
 0x203   :  { %v571_v46 = vpop.f32.mrb[3].mxu1 }
 0x204   :  { %v461_v37 = vadd.f32 %v569_v35, %v532_v49  ;;  %v572_v38 = vadd.f32 %v571_v46, %v570_v36 }
 0x206   :  { %v464_v39 = vadd.f32 %v572_v38, %v532_v49  ;;  %v467_v52 = vadd.f32 %v461_v37, %v728_v17 }
 0x208   :  { %471 = vadd.xlane.f32.xlu0 %v467_v52  ;;  %v468_v40 = vadd.f32 %v464_v39, %v733_v18 }
 0x20c   :  { %473 = vadd.xlane.f32.xlu0 %v468_v40 }
 0x295   :  { %v472_v41 = vpop.xlane.xlu0 %471 }
 0x296   :  { %v476_v42 = vmul.f32 0.0078125, %v472_v41 }
 0x298   :  { %v478_v43 = vsub.f32 %v467_v52, %v476_v42 }
 0x299   :  { %v474_v45 = vpop.xlane.xlu0 %473 }
 0x29a   :  { %v477_v47 = vmul.f32 0.0078125, %v474_v45  ;;  %v480_v50 = vmul.f32 %v478_v43, %v478_v43 }
 0x29c   :  { %v479_v53 = vsub.f32 %v468_v40, %v477_v47  ;;  %482 = vadd.xlane.f32.xlu1 %v480_v50 }
 0x29e   :  { %v481_v55 = vmul.f32 %v479_v53, %v479_v53 }
 0x2a0   :  { %484 = vadd.xlane.f32.xlu1 %v481_v55 }
 0x329   :  { %v483_v56 = vpop.xlane.xlu1 %482 }
 0x32a   :  { %v486_v57 = vmul.f32 0.0078125, %v483_v56 }
 0x32c   :  { %v488_v58 = vadd.f32 1e-12, %v486_v57 }
 0x32d   :  { %v485_v60 = vpop.xlane.xlu1 %484 }
 0x32e   :  { %631 = vrsqrt.f32 %v488_v58  ;;  %v487_v17 = vmul.f32 0.0078125, %v485_v60 }
 0x330   :  { %v489_v61 = vadd.f32 1e-12, %v487_v17 }
 0x332   :  { %633 = vrsqrt.f32 %v489_v61 }
 0x338   :  { %v632_v18 = vpop.eup %631 }
 0x339   :  { %v492_v63 = vmul.f32 %v632_v18, %v478_v43 }
 0x33b   :  { %v500_v1 = vmul.f32 %v549_v62, %v492_v63 }
 0x33c   :  { %v634_v2 = vpop.eup %633 }
 0x33d   :  { %v508_v3 = vadd.f32 %v550_v0, %v500_v1  ;;  %v493_v4 = vmul.f32 %v634_v2, %v479_v53 }
 0x33f   :  { %510 = vst [vmem:[%s844_s7] sm:$0xff] %v508_v3  ;;  %v501_v6 = vmul.f32 %v549_v62, %v493_v4 }
 0x341   :  { %v509_v7 = vadd.f32 %v550_v0, %v501_v6 }
 0x343   :  { %511 = vst [vmem:[%s844_s7 + $0x8] sm:$0xff] %v509_v7 }

// kernel: xlnet_class_l1_forward.5
= control target key start
LH: loop header
LB: loop body
LE: loop exit
PB: predicated region body
PF: predicated region fallthrough
CT: control target
= control target key end

     0   :  { %s2673_s29 = smov 0   ;;  %s3138_s0 = inlined_call_operand.vmem [shape: f32[2,8,128], index: 0, kind: input, shape index: {}]   ;;  %s3139_s1 = inlined_call_operand.vmem [shape: bf16[16,128], index: 1, kind: input, shape index: {}]   ;;  %s3140_s2 = inlined_call_operand.vmem [shape: bf16[128,384], index: 2, kind: input, shape index: {}]   ;;  %s3141_s3 = inlined_call_operand.vmem [shape: bf16[128,128], index: 3, kind: input, shape index: {}]   ;;  %s3142_s4 = inlined_call_operand.vmem [shape: f32[1,128], index: 4, kind: input, shape index: {}]   ;;  %s3143_s5 = inlined_call_operand.vmem [shape: f32[1,128], index: 5, kind: input, shape index: {}]   ;;  %s3144_s6 = inlined_call_operand.vmem [shape: f32[1,128], index: 6, kind: input, shape index: {}]   ;;  %s3145_s7 = inlined_call_operand.vmem [shape: f32[2,128], index: 7, kind: input, shape index: {}]   ;;  %s3146_s8 = inlined_call_operand.vmem [shape: f32[2,1,8], index: 8, kind: input, shape index: {}]   ;;  %s3147_s9 = inlined_call_operand.vmem [shape: f32[2,8,1], index: 9, kind: input, shape index: {}]   ;;  %s3148_s10 = inlined_call_operand.vmem [shape: f32[2,1,8], index: 10, kind: input, shape index: {}]   ;;  %s3149_s11 = inlined_call_operand.vmem [shape: bf16[128,128], index: 11, kind: input, shape index: {}]   ;;  %s3150_s12 = inlined_call_operand.vmem [shape: f32[1,128], index: 12, kind: input, shape index: {}]   ;;  %s3151_s13 = inlined_call_operand.vmem [shape: f32[1,128], index: 13, kind: input, shape index: {}]   ;;  %s3152_s14 = inlined_call_operand.vmem [shape: f32[2,8,128], index: 14, kind: output, shape index: {}]  }
   0x1 LB: > { %s2188_s30 = sadd.s32 4294967295, %s2581_s29   ;;  %p2192_p0 = scmp.ge.s32.totalorder %s2581_s29, 1  ;;  %s2581_s29 = sphi %s2673_s29, %s24_s29  }
   0x2   : > { %p436_p1 = scmp.lt.s32.totalorder %s2581_s29, 3 }
   0x4   : > { %p437_p2 = pnand %p2192_p0, %p436_p1 }
   0x5   : > { %v2507_v0 = vld [vmem:[%s3140_s2 + $0x4] ss:$12 sps:$4 sm:$0xff] (!%p437_p2)   ;;  %v2509_v1 = vld [vmem:[%s3140_s2] ss:$12 sps:$4 sm:$0xff] (!%p437_p2)   ;;  %v2583_v2 = vmov (!%p437_p2), 0   ;;  %v2584_v4 = vmov (!%p437_p2), 0.0  }
   0x6   : > { %440 = sbr.rel (%p437_p2) target bundleno = 4069 (0xfe5), region = 76  ;;  %703 = vmatprep.mubr.bf16.mxu0 (!%p437_p2), %v2583_v2  ;;  %2500 = vset.pattern.permute.xlu1 (!%p437_p2), %v2583_v2  ;;  %v2510_v3 = vld [vmem:[%s3140_s2 + $0x1c] ss:$12 sps:$4 sm:$0xff] (!%p437_p2)   ;;  %v2512_v5 = vld [vmem:[%s3140_s2 + $0x18] ss:$12 sps:$4 sm:$0xff] (!%p437_p2)   ;;  %vm2585_vm0 = vmmov (!%p437_p2), 0  }
   0x7   : > { %671 = vmatprep.subr.bf16.mxu0 (!%p437_p2), %v2507_v0  ;;  %2321 = vmatprep.subr.bf16.mxu1 (!%p437_p2), %v2584_v4  ;;  %v2513_v6 = vld [vmem:[%s3140_s2 + $0x34] ss:$12 sps:$4 sm:$0xff] (!%p437_p2)   ;;  %v2515_v7 = vld [vmem:[%s3140_s2 + $0x30] ss:$12 sps:$4 sm:$0xff] (!%p437_p2)   ;;  %v2516_v8 = vld [vmem:[%s3140_s2 + $0x4c] ss:$12 sps:$4 sm:$0xff] (!%p437_p2)  }
   0x8   : > { %672 = vmatpush1.bf16.msra.mxu0 (!%p437_p2), %v2509_v1  ;;  %2337 = vmatprep.mubr.msk.bf16.mxu1 (!%p437_p2), %vm2585_vm0, %v2584_v4  ;;  %p490_p3 = scmp.lt.s32.totalorder (!%p437_p2), %s2188_s30, 1  ;;  %v2518_v9 = vld [vmem:[%s3140_s2 + $0x48] ss:$12 sps:$4 sm:$0xff] (!%p437_p2)   ;;  %v2519_v10 = vld [vmem:[%s3140_s2 + $0x64] ss:$12 sps:$4 sm:$0xff] (!%p437_p2)   ;;  %v2534_v23 = vld [vmem:[%s3141_s3 + $0x18] sm:$0xff] (!%p437_p2)  }
   0x9   : > { %673 = vmatprep.subr.bf16.mxu0 (!%p437_p2), %v2510_v3  ;;  %v2521_v11 = vld [vmem:[%s3140_s2 + $0x60] ss:$12 sps:$4 sm:$0xff] (!%p437_p2)   ;;  %v2522_v12 = vld [vmem:[%s3140_s2 + $0x7c] ss:$12 sps:$4 sm:$0xff] (!%p437_p2)   ;;  %v2524_v13 = vld [vmem:[%s3140_s2 + $0x78] ss:$12 sps:$4 sm:$0xff] (!%p437_p2)  }
   0xa   : > { %v2525_v14 = vld [vmem:[%s3140_s2 + $0x94] ss:$12 sps:$4 sm:$0xff] (!%p437_p2)   ;;  %v2527_v15 = vld [vmem:[%s3140_s2 + $0x90] ss:$12 sps:$4 sm:$0xff] (!%p437_p2)   ;;  %v2528_v16 = vld [vmem:[%s3140_s2 + $0xac] ss:$12 sps:$4 sm:$0xff] (!%p437_p2)  }
   0xb   : > { %v2530_v17 = vld [vmem:[%s3140_s2 + $0xa8] ss:$12 sps:$4 sm:$0xff] (!%p437_p2)   ;;  %v2531_v20 = vld [vmem:[%s3141_s3] sm:$0xff] (!%p437_p2)   ;;  %v2538_v27 = vld [vmem:[%s3141_s3 + $0x38] sm:$0xff] (!%p437_p2)   ;;  %vm928_vm1 = vcmask (!%p437_p2), 261120   ;;  %vm1003_vm2 = vcmask (!%p437_p2), 1043456  }
   0xc   : > { %674 = vmatpush1.bf16.msra.mxu0 (!%p437_p2), %v2512_v5  ;;  %v2532_v21 = vld [vmem:[%s3141_s3 + $0x8] sm:$0xff] (!%p437_p2)   ;;  %v2533_v22 = vld [vmem:[%s3141_s3 + $0x10] sm:$0xff] (!%p437_p2)   ;;  %v2535_v24 = vld [vmem:[%s3141_s3 + $0x20] sm:$0xff] (!%p437_p2)   ;;  %v2586_v5 = vmov (!%p437_p2), 1   ;;  %s2587_s16 = smov (!%p437_p2), 3   ;;  %s2588_s17 = smov (!%p437_p2), 1  }
   0xd   : > { %675 = vmatprep.subr.bf16.mxu0 %v2513_v6  ;;  %s3160_s30 = smov (!%p490_p3, %s2188_s30), 1  ;;  %v2536_v25 = vld [vmem:[%s3141_s3 + $0x28] sm:$0xff]   ;;  %v2537_v26 = vld [vmem:[%s3141_s3 + $0x30] sm:$0xff]   ;;  %v2539_v28 = vld [vmem:[%s3139_s1] sm:$0xff]   ;;  %2501 = vset.pattern.permute.xlu0 %v2586_v5  ;;  %s2589_s18 = smov 4   ;;  %vm997_vm3 = vcmask 1040384  }
   0xe   : > { %s2722_s23 = sshll.u32 %s3160_s30, 3  ;;  %v2540_v29 = vld [vmem:[%s3140_s2 + $0x8] ss:$12 sps:$4 sm:$0xff]   ;;  %v2541_v30 = vld [vmem:[%s3140_s2 + $0x20] ss:$12 sps:$4 sm:$0xff]   ;;  %s2590_s19 = smov 2  }
   0xf   : > { %s2740_s20 = scalar_lea.vmem %s3138_s0, %s2722_s23  ;;  %2322 = vmatpush3.bf16.msra.mxu1 %v2540_v29  ;;  %v2542_v31 = vld [vmem:[%s3140_s2 + $0x38] ss:$12 sps:$4 sm:$0xff]   ;;  %v2543_v32 = vld [vmem:[%s3140_s2 + $0x50] ss:$12 sps:$4 sm:$0xff]   ;;  %v2544_v33 = vld [vmem:[%s3140_s2 + $0x68] ss:$12 sps:$4 sm:$0xff]   ;;  %s500_s24 = scalar_lea.vmem %s3147_s9, %s2722_s23 }
  0x10   : > { %676 = vmatpush1.bf16.msra.mxu0 %v2515_v7  ;;  %v509_v18 = vld [vmem:[%s2740_s20] sm:$0xff]  ;;  %2323 = vmatprep.subr.bf16.mxu1 %v2584_v4  ;;  %v2547_v36 = vld [vmem:[%s3140_s2 + $0xb0] ss:$12 sps:$4 sm:$0xff]   ;;  %s2591_s25 = smov 6   ;;  %s3155_s26 = smov 5   ;;  %vm999_vm4 = vcmask 1041408  }
  0x11   : > { %677 = vmatprep.subr.bf16.mxu0 %v2516_v8  ;;  %v510_v19 = vpack.c.bf16 %v509_v18, %v509_v18  ;;  %v2545_v34 = vld [vmem:[%s3140_s2 + $0x80] ss:$12 sps:$4 sm:$0xff]   ;;  %v2546_v35 = vld [vmem:[%s3140_s2 + $0x98] ss:$12 sps:$4 sm:$0xff]   ;;  %s3153_s27 = smov 7   ;;  %vm1001_vm5 = vcmask 1042432   ;;  %s503_s22 = scalar_lea.vmem %s3148_s10, %s3160_s30 }
  0x12   : > { %v2230_v46 = vld [vmem:[%s3143_s5] ss:$0 sm:$0xff]  ;;  %vm1005_vm6 = vcmask 1044480   ;;  %vm1007_vm7 = vcmask 1045504   ;;  %vm1009_vm8 = vcmask 1046528   ;;  %s2594_s28 = smov 120  }
  0x13   : > { %2324 = vmatpush3.bf16.msra.mxu1 %v2541_v30  ;;  %v889_v47 = vld [vmem:[%s3145_s7] sm:$0x3]  ;;  %vm1120_vm11 = vcmask 64512   ;;  %s2596_s15 = smov 64   ;;  %s2597_s21 = smov 32   ;;  %vm1967_vm12 = vcmask 523264  }
  0x14   : > { %678 = vmatpush1.bf16.msra.mxu0 %v2518_v9  ;;  %2325 = vmatprep.subr.bf16.mxu1 %v2584_v4  ;;  %v2831_v50 = vpack.c.bf16 %v889_v47, %v889_v47  ;;  %v2231_v53 = vld [vmem:[%s3144_s6] ss:$0 sm:$0xff]  ;;  %vm1969_vm13 = vcmask 785408  }
  0x15   : > { %679 = vmatprep.subr.bf16.mxu0 %v2519_v10  ;;  %v2229_v57 = vld [vmem:[%s3142_s4] ss:$0 sm:$0xff] }
  0x16   : > { %v1015_v52 = vsel %vm928_vm1, %v2831_v50, 0 }
  0x17   : > { %2326 = vmatpush3.bf16.msra.mxu1 %v2542_v31 }
  0x18   : > { %680 = vmatpush1.bf16.msra.mxu0 %v2521_v11  ;;  %2327 = vmatprep.subr.bf16.mxu1 %v2584_v4 }
  0x19   : > { %681 = vmatprep.subr.bf16.mxu0 %v2522_v12 }
  0x1b   : > { %2328 = vmatpush3.bf16.msra.mxu1 %v2543_v32 }
  0x1c   : > { %682 = vmatpush1.bf16.msra.mxu0 %v2524_v13  ;;  %2329 = vmatprep.subr.bf16.mxu1 %v2584_v4  ;;  %v907_v13 = vld [vmem:[%s500_s24] sm:$0xff] }
  0x1d   : > { %683 = vmatprep.subr.bf16.mxu0 %v2525_v14 }
  0x1f   : > { %2330 = vmatpush3.bf16.msra.mxu1 %v2544_v33  ;;  %v891_v33 = vlaneseq }
  0x20   : > { %684 = vmatpush1.bf16.msra.mxu0 %v2527_v15  ;;  %2331 = vmatprep.subr.bf16.mxu1 %v2584_v4 }
  0x21   : > { %685 = vmatprep.subr.bf16.mxu0 %v2528_v16 }
  0x23   : > { %2332 = vmatpush3.bf16.msra.mxu1 %v2545_v34  ;;  %v890_v34 = vld [vmem:[%s503_s22] sm:$0x1] }
  0x24   : > { %686 = vmatpush1.bf16.msra.mxu0 %v2530_v17  ;;  %2333 = vmatprep.subr.bf16.mxu1 %v2584_v4 }
  0x25   : > { %2341 = vmatprep.subr.bf16.mxu0 %v2584_v4 }
  0x27   : > { %704 = vmatmul.mubr.bf16.vlgmr.msra.gmra.mrb[0].mxu0 %v510_v19  ;;  %2334 = vmatpush3.bf16.msra.mxu1 %v2546_v35 }
  0x28   : > { %2342 = vmatpush3.bf16.msra.mxu0 %v2531_v20  ;;  %2357 = vmatprep.mubr.msk.bf16.mxu0 %vm2585_vm0, %v2584_v4 }
  0x29   : > { %2343 = vmatprep.subr.bf16.mxu0 %v2584_v4  ;;  %2335 = vmatprep.subr.bf16.mxu1 %v2584_v4 }
  0x2b   : > { %2336 = vmatpush3.bf16.msra.mxu1 %v2547_v36  ;;  %v892_v36 = vshrl.u32 %v891_v33, 7 }
  0x2c   : > { %2344 = vmatpush3.bf16.msra.mxu0 %v2532_v21  ;;  %2361 = vmatprep.subr.bf16.mxu1 %v2584_v4 }
  0x2d   : > { %2345 = vmatprep.subr.bf16.mxu0 %v2584_v4 }
  0x2e   : > { %2338 = vmatmul.mubr.bf16.vlgmr.msra.gmra.mrb[0].mxu1 %v510_v19 }
  0x2f   : > { %2363 = vmatprep.mubr.msk.bf16.mxu1 %vm2585_vm0, %v2584_v4 }
  0x30   : > { %2346 = vmatpush3.bf16.msra.mxu0 %v2533_v22 }
  0x31   : > { %2347 = vmatprep.subr.bf16.mxu0 %v2584_v4 }
  0x34   : > { %2348 = vmatpush3.bf16.msra.mxu0 %v2534_v23 }
  0x35   : > { %2349 = vmatprep.subr.bf16.mxu0 %v2584_v4 }
  0x38   : > { %2350 = vmatpush3.bf16.msra.mxu0 %v2535_v24 }
  0x39   : > { %2351 = vmatprep.subr.bf16.mxu0 %v2584_v4 }
  0x3c   : > { %2352 = vmatpush3.bf16.msra.mxu0 %v2536_v25 }
  0x3d   : > { %2353 = vmatprep.subr.bf16.mxu0 %v2584_v4 }
  0x40   : > { %2354 = vmatpush3.bf16.msra.mxu0 %v2537_v26 }
  0x41   : > { %2355 = vmatprep.subr.bf16.mxu0 %v2584_v4 }
  0x44   : > { %2356 = vmatpush3.bf16.msra.mxu0 %v2538_v27 }
  0x45   : > { %2409 = vmatprep.subr.bf16.mxu0 %v2584_v4 }
  0x47   : > { %2358 = vmatmul.mubr.bf16.vlgmr.msra.gmra.mrb[4].mxu0 %v2539_v28 }
  0x48   : > { %2411 = vmatprep.mubr.msk.bf16.mxu0 %vm2585_vm0, %v2584_v4 }
  0xfa   : > { %v705_v37 = vpop.f32.mrb[0].mxu0 }
  0xfb   : > { %v707_v38 = vpop.f32.mrb[1].mxu0  ;;  %v880_v49 = vadd.f32 %v2230_v46, %v705_v37  ;;  %v888_v54 = vadd.f32 %v2231_v53, %v705_v37  ;;  %v872_v59 = vadd.f32 %v2229_v57, %v705_v37  ;;  %v898_v37 = vsub.f32 1.0, %v890_v34 }
  0xfc   : > { %v709_v39 = vpop.f32.mrb[2].mxu0  ;;  %v2845_v55 = vpack.c.bf16 %v707_v38, %v707_v38  ;;  %v894_v38 = vand.u32 127, %v891_v33 }
  0xfd   : > { %v710_v40 = vpop.f32.mrb[3].mxu0  ;;  %v2833_v51 = vpack.c.bf16 %v880_v49, %v880_v49  ;;  %v2847_v56 = vpack.c.bf16 %v888_v54, %v888_v54  ;;  %v2859_v60 = vpack.c.bf16 %v872_v59, %v872_v59  ;;  %v899_v39 = vmul.f32 -1e+30, %v898_v37 }
  0xfe   : > { %v1075_v58 = vsel %vm928_vm1, %v2845_v55, 0  ;;  %v903_v40 = vsub.s32 0, %v892_v36  ;;  %vm895_vm9 = vcmp.ne.s32.totalorder %v892_v36, %v894_v38 }
  0xff   : > { %v2232_v47 = vsel %vm895_vm9, 1.0, %v2584_v4 }
 0x101   : > { %v746_v61 = vpop.f32.mrb[0].mxu1 }
 0x102   : > { %v2865_v62 = vpack.c.bf16 %v746_v61, %v746_v61  ;;  %v2339_v63 = vpop.f32.mrb[1].mxu1 }
 0x103   : > { %v749_v0 = vpop.f32.mrb[2].mxu1 }
 0x104   : > { %v2340_v1 = vpop.f32.mrb[3].mxu1  ;;  %v1137_v3 = vsel %vm1003_vm2, %v2865_v62, 0 }
 0x11a   : > { %v858_v41 = vpop.f32.mrb[4].mxu0 }
 0x11b   : > { %v2359_v42 = vpop.f32.mrb[5].mxu0 }
 0x11c   : > { %v861_v43 = vpop.f32.mrb[6].mxu0 }
 0x11d   : > { %v2820_v44 = vpack.c.bf16 %v861_v43, %v858_v41  ;;  %v2360_v45 = vpop.f32.mrb[7].mxu0 }
 0x11e   : > { %v904_v45 = vrot.slane %v899_v39, %v903_v40 }
 0x11f   : > { %v933_v48 = vsel %vm928_vm1, %v2820_v44, 0 }
 0x120   : > { %2362 = vmatpush3.bf16.xpose.msra.mxu1 %v933_v48  ;;  %v2910_v53 = vmul.f32 %v2232_v47, %v904_v45 }
 0x121   : > { %2367 = vmatprep.subr.bf16.mxu1 %v2584_v4 }
 0x127   : > { %2364 = vmatmul.mubr.msk.bf16.vlgmr.msra.gmra.mrb[4].mxu1 %vm928_vm1, %v2833_v51 }
 0x128   : > { %2368 = vmatpush3.bf16.xpose.msra.mxu1 %v1015_v52  ;;  %2369 = vmatprep.mubr.msk.bf16.mxu1 %vm2585_vm0, %v2584_v4 }
 0x129   : > { %2373 = vmatprep.subr.bf16.mxu1 %v2584_v4 }
 0x12f   : > { %2370 = vmatmul.mubr.msk.bf16.vlgmr.msra.gmra.mrb[8].mxu1 %vm928_vm1, %v2847_v56 }
 0x130   : > { %2374 = vmatpush3.bf16.xpose.msra.mxu1 %v1075_v58  ;;  %2375 = vmatprep.mubr.msk.bf16.mxu1 %vm2585_vm0, %v2584_v4 }
 0x131   : > { %2379 = vmatprep.subr.bf16.mxu1 %v2584_v4 }
 0x137   : > { %2376 = vmatmul.mubr.msk.bf16.vlgmr.msra.gmra.mrb[12].mxu1 %vm928_vm1, %v2859_v60 }
 0x138   : > { %2381 = vmatprep.mubr.msk.bf16.mxu1 %vm2585_vm0, %v2584_v4  ;;  %2380 = vmatpush3.bf16.msra.mxu1 %v1137_v3 }
 0x139   : > { %2385 = vmatprep.subr.bf16.mxu1 %v2584_v4 }
 0x1fa   : > { %v969_v6 = vpop.f32.mrb[4].mxu1 }
 0x1fb   : > { %982 = vrot.lane.b32.xlu1 %v969_v6, %s2587_s16  ;;  %976 = vrot.lane.b32.xlu0 %v969_v6, %s2588_s17  ;;  %v2365_v7 = vpop.f32.mrb[5].mxu1 }
 0x1fc   : > { %v972_v8 = vpop.f32.mrb[6].mxu1 }
 0x1fd   : > { %v2366_v9 = vpop.f32.mrb[7].mxu1 }
 0x1ff   : > { %985 = vrot.lane.b32.xlu1 %v969_v6, %s2589_s18  ;;  %979 = vrot.lane.b32.xlu0 %v969_v6, %s2590_s19 }
 0x202   : > { %v1051_v10 = vpop.f32.mrb[8].mxu1 }
 0x203   : > { %991 = vrot.lane.b32.xlu1 %v969_v6, %s2591_s25  ;;  %988 = vrot.lane.b32.xlu0 %v969_v6, %s3155_s26  ;;  %v2371_v11 = vpop.f32.mrb[9].mxu1  ;;  %s496_s26 = scalar_lea.vmem %s3146_s8, %s3160_s30  ;;  %s2595_s30 = smov 96  }
 0x204   : > { %v1054_v12 = vpop.f32.mrb[10].mxu1  ;;  %v2902_v41 = vld [vmem:[%s496_s26] ss:$0 sm:$0xff]  ;;  %s3157_s26 = smov 5  }
 0x205   : > { %v2372_v14 = vpop.f32.mrb[11].mxu1 }
 0x207   : > { %911 = vperm.xlu1 %2500, %v907_v13   ;;  %994 = vrot.lane.b32.xlu0 %v969_v6, %s3153_s27  ;;  %s3158_s27 = smov 7  }
 0x20a   : > { %v1111_v15 = vpop.f32.mrb[12].mxu1 }
 0x20b   : > { %1063 = vperm.xlu1 %2500, %v1051_v10   ;;  %1059 = vperm.xlu0 %2501, %v1051_v10   ;;  %v2377_v16 = vpop.f32.mrb[13].mxu1 }
 0x20c   : > { %v1114_v17 = vpop.f32.mrb[14].mxu1 }
 0x20d   : > { %v2378_v18 = vpop.f32.mrb[15].mxu1 }
 0x20f   : > { %2502 = vset.pattern.permute.xlu1 %v2586_v5  ;;  %2503 = vset.pattern.permute.xlu0 %v2583_v2 }
 0x26d   : > { %v983_v19 = vpop.permute.xlu1 %982  ;;  %v977_v20 = vpop.permute.xlu0 %976 }
 0x26e   : > { %v998_v21 = vsel %vm997_vm3, %v969_v6, %v977_v20 }
 0x271   : > { %v986_v22 = vpop.permute.xlu1 %985  ;;  %v980_v23 = vpop.permute.xlu0 %979 }
 0x272   : > { %v1000_v24 = vsel %vm999_vm4, %v998_v21, %v980_v23 }
 0x273   : > { %v1002_v25 = vsel %vm1001_vm5, %v1000_v24, %v983_v19 }
 0x274   : > { %v1004_v26 = vsel %vm1003_vm2, %v1002_v25, %v986_v22 }
 0x275   : > { %v989_v27 = vpop.permute.xlu0 %988  ;;  %v992_v28 = vpop.permute.xlu1 %991 }
 0x276   : > { %v1006_v29 = vsel %vm1005_vm6, %v1004_v26, %v989_v27 }
 0x277   : > { %v1008_v31 = vsel %vm1007_vm7, %v1006_v29, %v992_v28 }
 0x279   : > { %v995_v30 = vpop.permute.xlu0 %994 }
 0x27a   : > { %v1010_v32 = vsel %vm1009_vm8, %v1008_v31, %v995_v30 }
 0x27b   : > { %1068 = vrot.lane.b32.xlu1 %v1010_v32, %s2594_s28 }
 0x286   : > { %v2896_v35 = vpop.permute.xlu1 %911 }
 0x287   : > { %vm920_vm10 = vcmp.ne.f32.partialorder %v2896_v35, %v2902_v41 }
 0x28a   : > { %v1064_v42 = vpop.permute.xlu1 %1063  ;;  %v1060_v43 = vpop.permute.xlu0 %1059 }
 0x28b   : > { %v1066_v49 = vsel %vm920_vm10, %v1060_v43, %v1064_v42 }
 0x2ed   : > { %v1069_v46 = vpop.permute.xlu1 %1068 }
 0x2ee   : > { %v1112_v48 = vadd.f32 %v1111_v15, %v1069_v46 }
 0x2f0   : > { %v1117_v52 = vadd.f32 %v1112_v48, %v1066_v49 }
 0x2f2   : > { %v1118_v54 = vmul.f32 0.17677669, %v1117_v52 }
 0x2f4   : > { %v1119_v57 = vadd.f32 %v1118_v54, %v2910_v53 }
 0x2f6   : > { %v1121_v58 = vsel %vm1120_vm11, %v1119_v57, -inf }
 0x2f7   : > { %1122 = vmax.xlane.f32.xlu0 %v1121_v58 }
 0x30d   : > { %1183 = vrot.lane.b32.xlu0 %v2820_v44, %s2595_s30 }
 0x311   : > { %1264 = vrot.lane.b32.xlu0 %v2831_v50, %s2595_s30 }
 0x315   : > { %1326 = vrot.lane.b32.xlu0 %v2845_v55, %s2595_s30 }
 0x384   : > { %v1123_v59 = vpop.xlane.xlu0 %1122 }
 0x385   : > { %v1124_v61 = vsub.f32 %v1119_v57, %v1123_v59 }
 0x387   : > { %v1125_v63 = vmul.f32 1.442695, %v1124_v61 }
 0x388   : > { %v1184_v8 = vpop.permute.xlu0 %1183 }
 0x389   : > { %2556 = vpow2.f32 %v1125_v63  ;;  %v1189_v10 = vsel %vm928_vm1, %v1184_v8, 0 }
 0x38c   : > { %v1265_v11 = vpop.permute.xlu0 %1264 }
 0x38d   : > { %v1270_v12 = vsel %vm928_vm1, %v1265_v11, 0 }
 0x390   : > { %v1327_v14 = vpop.permute.xlu0 %1326 }
 0x391   : > { %v1336_v16 = vsel %vm928_vm1, %v1327_v14, 0 }
 0x393   : > { %v2557_v0 = vpop.eup %2556 }
 0x394   : > { %v1127_v1 = vsel %vm1120_vm11, %v2557_v0, 0.0 }
 0x395   : > { %1128 = vadd.xlane.f32.xlu1 %v1127_v1 }
 0x3a6   : > { %1180 = vrot.lane.b32.xlu1 %v2833_v51, %s2595_s30 }
 0x3aa   : > { %1261 = vrot.lane.b32.xlu1 %v2847_v56, %s2595_s30 }
 0x3ae   : > { %1323 = vrot.lane.b32.xlu1 %v2859_v60, %s2595_s30 }
 0x422   : > { %v1129_v3 = vpop.xlane.xlu1 %1128 }
 0x423   : > { %2558 = vrcp.f32 %v1129_v3 }
 0x426   : > { %v1181_v13 = vpop.permute.xlu1 %1180 }
 0x42a   : > { %v1262_v15 = vpop.permute.xlu1 %1261 }
 0x42d   : > { %v2559_v6 = vpop.eup %2558 }
 0x42e   : > { %v1131_v7 = vmul.f32 %v2559_v6, %v2557_v0  ;;  %v1324_v17 = vpop.permute.xlu1 %1323 }
 0x430   : > { %v1132_v9 = vpack.c.bf16 %v1131_v7, %v1131_v7 }
 0x432   : > { %2382 = vmatmul.mubr.msk.bf16.vlgmr.msra.gmra.mrb[16].mxu1 %vm1120_vm11, %v1132_v9 }
 0x433   : > { %2386 = vmatpush3.bf16.xpose.msra.mxu1 %v1189_v10  ;;  %2387 = vmatprep.mubr.msk.bf16.mxu1 %vm2585_vm0, %v2584_v4 }
 0x434   : > { %2391 = vmatprep.subr.bf16.mxu1 %v2584_v4 }
 0x43a   : > { %2388 = vmatmul.mubr.msk.bf16.vlgmr.msra.gmra.mrb[20].mxu1 %vm928_vm1, %v1181_v13 }
 0x43b   : > { %2392 = vmatpush3.bf16.xpose.msra.mxu1 %v1270_v12  ;;  %2393 = vmatprep.mubr.msk.bf16.mxu1 %vm2585_vm0, %v2584_v4 }
 0x43c   : > { %2397 = vmatprep.subr.bf16.mxu1 %v2584_v4 }
 0x442   : > { %2394 = vmatmul.mubr.msk.bf16.vlgmr.msra.gmra.mrb[24].mxu1 %vm928_vm1, %v1262_v15 }
 0x443   : > { %2398 = vmatpush3.bf16.xpose.msra.mxu1 %v1336_v16  ;;  %2399 = vmatprep.mubr.msk.bf16.mxu1 %vm2585_vm0, %v2584_v4 }
 0x444   : > { %2403 = vmatprep.subr.bf16.mxu1 %v2584_v4 }
 0x44a   : > { %2400 = vmatmul.mubr.msk.bf16.vlgmr.msra.gmra.mrb[28].mxu1 %vm928_vm1, %v1324_v17 }
 0x44b   : > { %2405 = vmatprep.mubr.msk.bf16.mxu1 %vm2585_vm0, %v2584_v4 }
 0x505   : > { %v2945_v18 = vpop.f32.mrb[16].mxu1 }
 0x506   : > { %v2383_v19 = vpop.f32.mrb[17].mxu1 }
 0x507   : > { %v1176_v20 = vpop.f32.mrb[18].mxu1 }
 0x508   : > { %v2384_v21 = vpop.f32.mrb[19].mxu1 }
 0x50d   : > { %v1225_v22 = vpop.f32.mrb[20].mxu1 }
 0x50e   : > { %1235 = vrot.lane.b32.xlu1 %v1225_v22, %s2590_s19  ;;  %1232 = vrot.lane.b32.xlu0 %v1225_v22, %s2588_s17  ;;  %v2389_v23 = vpop.f32.mrb[21].mxu1 }
 0x50f   : > { %v1228_v24 = vpop.f32.mrb[22].mxu1 }
 0x510   : > { %v2390_v25 = vpop.f32.mrb[23].mxu1 }
 0x512   : > { %1241 = vrot.lane.b32.xlu1 %v1225_v22, %s2589_s18  ;;  %1238 = vrot.lane.b32.xlu0 %v1225_v22, %s2587_s16 }
 0x515   : > { %v1306_v26 = vpop.f32.mrb[24].mxu1 }
 0x516   : > { %1247 = vrot.lane.b32.xlu1 %v1225_v22, %s2591_s25  ;;  %1244 = vrot.lane.b32.xlu0 %v1225_v22, %s3157_s26  ;;  %v2395_v27 = vpop.f32.mrb[25].mxu1 }
 0x517   : > { %v1309_v28 = vpop.f32.mrb[26].mxu1 }
 0x518   : > { %v2396_v29 = vpop.f32.mrb[27].mxu1 }
 0x51a   : > { %1250 = vrot.lane.b32.xlu0 %v1225_v22, %s3158_s27  ;;  %1314 = vperm.xlu1 %2502, %v1306_v26  }
 0x51d   : > { %v1372_v30 = vpop.f32.mrb[28].mxu1 }
 0x51e   : > { %1318 = vperm.xlu0 %2503, %v1306_v26   ;;  %v2401_v31 = vpop.f32.mrb[29].mxu1 }
 0x51f   : > { %v1375_v32 = vpop.f32.mrb[30].mxu1 }
 0x520   : > { %v2402_v33 = vpop.f32.mrb[31].mxu1 }
 0x522   : > { %1444 = vrot.lane.b32.xlu0 %v2820_v44, %s2596_s15 }
 0x526   : > { %1442 = vrot.lane.b32.xlu0 %v2833_v51, %s2596_s15 }
 0x580   : > { %v1236_v34 = vpop.permute.xlu1 %1235  ;;  %v1233_v36 = vpop.permute.xlu0 %1232 }
 0x581   : > { %v1253_v37 = vsel %vm997_vm3, %v1225_v22, %v1233_v36 }
 0x582   : > { %v1254_v39 = vsel %vm999_vm4, %v1253_v37, %v1236_v34 }
 0x584   : > { %v1242_v38 = vpop.permute.xlu1 %1241  ;;  %v1239_v40 = vpop.permute.xlu0 %1238 }
 0x585   : > { %v1255_v42 = vsel %vm1001_vm5, %v1254_v39, %v1239_v40 }
 0x586   : > { %v1256_v43 = vsel %vm1003_vm2, %v1255_v42, %v1242_v38 }
 0x588   : > { %v1245_v45 = vpop.permute.xlu0 %1244  ;;  %v1248_v46 = vpop.permute.xlu1 %1247 }
 0x589   : > { %v1257_v47 = vsel %vm1005_vm6, %v1256_v43, %v1245_v45 }
 0x58a   : > { %v1258_v49 = vsel %vm1007_vm7, %v1257_v47, %v1248_v46 }
 0x58c   : > { %v1251_v48 = vpop.permute.xlu0 %1250 }
 0x58d   : > { %v1259_v52 = vsel %vm1009_vm8, %v1258_v49, %v1251_v48 }
 0x58e   : > { %1329 = vrot.lane.b32.xlu1 %v1259_v52, %s2594_s28 }
 0x599   : > { %v1315_v61 = vpop.permute.xlu1 %1314 }
 0x59d   : > { %v1319_v54 = vpop.permute.xlu0 %1318 }
 0x59e   : > { %v1321_v1 = vsel %vm920_vm10, %v1315_v61, %v1319_v54 }
 0x5a1   : > { %v1445_v57 = vpop.permute.xlu0 %1444 }
 0x5a2   : > { %v1450_v58 = vsel %vm928_vm1, %v1445_v57, 0 }
 0x5a3   : > { %2410 = vmatpush3.bf16.xpose.msra.mxu0 %v1450_v58 }
 0x5a4   : > { %2421 = vmatprep.subr.bf16.mxu0 %v2584_v4 }
 0x5a5   : > { %v1443_v59 = vpop.permute.xlu0 %1442 }
 0x5aa   : > { %2412 = vmatmul.mubr.msk.bf16.vlgmr.msra.gmra.mrb[8].mxu0 %vm928_vm1, %v1443_v59 }
 0x5ab   : > { %2423 = vmatprep.mubr.msk.bf16.mxu0 %vm2585_vm0, %v2584_v4 }
 0x600   : > { %v1330_v63 = vpop.permute.xlu1 %1329 }
 0x601   : > { %v1373_v0 = vadd.f32 %v1372_v30, %v1330_v63 }
 0x603   : > { %v1378_v3 = vadd.f32 %v1373_v0, %v1321_v1 }
 0x605   : > { %v1379_v6 = vmul.f32 0.17677669, %v1378_v3 }
 0x607   : > { %v1380_v7 = vadd.f32 %v1379_v6, %v2910_v53 }
 0x609   : > { %v1381_v8 = vsel %vm1120_vm11, %v1380_v7, -inf }
 0x60a   : > { %1382 = vmax.xlane.f32.xlu1 %v1381_v8 }
 0x61b   : > { %1394 = vrot.lane.b32.xlu1 %v2865_v62, %s2595_s30 }
 0x61f   : > { %1521 = vrot.lane.b32.xlu1 %v2847_v56, %s2596_s15 }
 0x623   : > { %1583 = vrot.lane.b32.xlu1 %v2845_v55, %s2596_s15 }
 0x627   : > { %1581 = vrot.lane.b32.xlu1 %v2859_v60, %s2596_s15 }
 0x67d   : > { %v1486_v9 = vpop.f32.mrb[8].mxu0 }
 0x67e   : > { %1496 = vrot.lane.b32.xlu1 %v1486_v9, %s2590_s19  ;;  %v2413_v10 = vpop.f32.mrb[9].mxu0 }
 0x67f   : > { %v1489_v11 = vpop.f32.mrb[10].mxu0 }
 0x680   : > { %v2414_v12 = vpop.f32.mrb[11].mxu0 }
 0x682   : > { %1502 = vrot.lane.b32.xlu1 %v1486_v9, %s2589_s18 }
 0x686   : > { %1508 = vrot.lane.b32.xlu1 %v1486_v9, %s2591_s25 }
 0x697   : > { %v1383_v13 = vpop.xlane.xlu1 %1382 }
 0x698   : > { %v1384_v14 = vsub.f32 %v1380_v7, %v1383_v13 }
 0x69a   : > { %v1385_v15 = vmul.f32 1.442695, %v1384_v14 }
 0x69b   : > { %v1395_v16 = vpop.permute.xlu1 %1394 }
 0x69c   : > { %2560 = vpow2.f32 %v1385_v15  ;;  %v1400_v17 = vsel %vm1003_vm2, %v1395_v16, 0 }
 0x69d   : > { %2404 = vmatpush3.bf16.msra.mxu1 %v1400_v17 }
 0x69e   : > { %2415 = vmatprep.subr.bf16.mxu1 %v2584_v4 }
 0x69f   : > { %v1522_v19 = vpop.permute.xlu1 %1521 }
 0x6a3   : > { %v1584_v20 = vpop.permute.xlu1 %1583 }
 0x6a4   : > { %v1593_v21 = vsel %vm928_vm1, %v1584_v20, 0 }
 0x6a5   : > { %2422 = vmatpush3.bf16.xpose.msra.mxu0 %v1593_v21 }
 0x6a6   : > { %v2561_v22 = vpop.eup %2560  ;;  %2433 = vmatprep.subr.bf16.mxu0 %v2584_v4 }
 0x6a7   : > { %v1387_v23 = vsel %vm1120_vm11, %v2561_v22, 0.0  ;;  %v1582_v24 = vpop.permute.xlu1 %1581 }
 0x6a8   : > { %1388 = vadd.xlane.f32.xlu0 %v1387_v23 }
 0x6ac   : > { %2424 = vmatmul.mubr.msk.bf16.vlgmr.msra.gmra.mrb[12].mxu0 %vm928_vm1, %v1582_v24 }
 0x6ad   : > { %2435 = vmatprep.mubr.msk.bf16.mxu0 %vm2585_vm0, %v2584_v4 }
 0x6be   : > { %1523 = vrot.lane.b32.xlu0 %v2831_v50, %s2596_s15 }
 0x6c2   : > { %1493 = vrot.lane.b32.xlu0 %v1486_v9, %s2588_s17 }
 0x6c6   : > { %1499 = vrot.lane.b32.xlu0 %v1486_v9, %s2587_s16 }
 0x6ca   : > { %1505 = vrot.lane.b32.xlu0 %v1486_v9, %s3157_s26 }
 0x6ce   : > { %1511 = vrot.lane.b32.xlu0 %v1486_v9, %s3158_s27 }
 0x6f0   : > { %v1497_v38 = vpop.permute.xlu1 %1496 }
 0x6f4   : > { %v1503_v48 = vpop.permute.xlu1 %1502 }
 0x6f8   : > { %v1509_v61 = vpop.permute.xlu1 %1508 }
 0x735   : > { %v1389_v25 = vpop.xlane.xlu0 %1388 }
 0x736   : > { %2562 = vrcp.f32 %v1389_v25 }
 0x739   : > { %v1524_v28 = vpop.permute.xlu0 %1523 }
 0x73a   : > { %v1529_v29 = vsel %vm928_vm1, %v1524_v28, 0 }
 0x73d   : > { %v1494_v36 = vpop.permute.xlu0 %1493 }
 0x73e   : > { %v1514_v39 = vsel %vm997_vm3, %v1486_v9, %v1494_v36 }
 0x73f   : > { %v1515_v45 = vsel %vm999_vm4, %v1514_v39, %v1497_v38 }
 0x740   : > { %v2563_v26 = vpop.eup %2562 }
 0x741   : > { %v1391_v27 = vmul.f32 %v2563_v26, %v2561_v22  ;;  %v1500_v37 = vpop.permute.xlu0 %1499 }
 0x742   : > { %v1516_v49 = vsel %vm1001_vm5, %v1515_v45, %v1500_v37 }
 0x743   : > { %v1392_v30 = vpack.c.bf16 %v1391_v27, %v1391_v27  ;;  %v1517_v52 = vsel %vm1003_vm2, %v1516_v49, %v1503_v48 }
 0x745   : > { %2406 = vmatmul.mubr.msk.bf16.vlgmr.msra.gmra.mrb[32].mxu1 %vm1120_vm11, %v1392_v30  ;;  %v1506_v46 = vpop.permute.xlu0 %1505 }
 0x746   : > { %2416 = vmatpush3.bf16.xpose.msra.mxu1 %v1529_v29  ;;  %2417 = vmatprep.mubr.msk.bf16.mxu1 %vm2585_vm0, %v2584_v4  ;;  %v1518_v54 = vsel %vm1005_vm6, %v1517_v52, %v1506_v46 }
 0x747   : > { %2427 = vmatprep.subr.bf16.mxu1 %v2584_v4  ;;  %v1519_v1 = vsel %vm1007_vm7, %v1518_v54, %v1509_v61 }
 0x749   : > { %v1512_v58 = vpop.permute.xlu0 %1511 }
 0x74a   : > { %v1520_v3 = vsel %vm1009_vm8, %v1519_v1, %v1512_v58 }
 0x74d   : > { %2418 = vmatmul.mubr.msk.bf16.vlgmr.msra.gmra.mrb[36].mxu1 %vm928_vm1, %v1522_v19 }
 0x74e   : > { %2429 = vmatprep.mubr.msk.bf16.mxu1 %vm2585_vm0, %v2584_v4 }
 0x77f   : > { %v1629_v31 = vpop.f32.mrb[12].mxu0 }
 0x780   : > { %v2425_v32 = vpop.f32.mrb[13].mxu0 }
 0x781   : > { %v1632_v33 = vpop.f32.mrb[14].mxu0 }
 0x782   : > { %v2426_v34 = vpop.f32.mrb[15].mxu0 }
 0x818   : > { %v3010_v40 = vpop.f32.mrb[32].mxu1 }
 0x819   : > { %v2407_v42 = vpop.f32.mrb[33].mxu1 }
 0x81a   : > { %v1439_v43 = vpop.f32.mrb[34].mxu1 }
 0x81b   : > { %v2408_v47 = vpop.f32.mrb[35].mxu1 }
 0x820   : > { %v1565_v57 = vpop.f32.mrb[36].mxu1 }
 0x821   : > { %v2419_v59 = vpop.f32.mrb[37].mxu1  ;;  %1573 = vperm.xlu1 %2502, %v1565_v57   ;;  %1577 = vperm.xlu0 %2503, %v1565_v57  }
 0x822   : > { %v1568_v63 = vpop.f32.mrb[38].mxu1 }
 0x823   : > { %v2420_v0 = vpop.f32.mrb[39].mxu1 }
 0x825   : > { %1586 = vrot.lane.b32.xlu1 %v1520_v3, %s2594_s28  ;;  %2504 = vset.pattern.permute.xlu0 %v2586_v5 }
 0x826   : > { %2505 = vset.pattern.permute.xlu1 %v2583_v2 }
 0x829   : > { %1700 = vrot.lane.b32.xlu1 %v2820_v44, %s2597_s21 }
 0x82d   : > { %1698 = vrot.lane.b32.xlu1 %v2833_v51, %s2597_s21 }
 0x8a0   : > { %v1574_v6 = vpop.permute.xlu1 %1573  ;;  %v1578_v7 = vpop.permute.xlu0 %1577 }
 0x8a1   : > { %v1580_v10 = vsel %vm920_vm10, %v1574_v6, %v1578_v7 }
 0x8a4   : > { %v1587_v8 = vpop.permute.xlu1 %1586 }
 0x8a5   : > { %v1630_v9 = vadd.f32 %v1629_v31, %v1587_v8 }
 0x8a7   : > { %v1635_v11 = vadd.f32 %v1630_v9, %v1580_v10 }
 0x8a8   : > { %v1701_v12 = vpop.permute.xlu1 %1700 }
 0x8a9   : > { %v1636_v5 = vmul.f32 0.17677669, %v1635_v11  ;;  %v1706_v13 = vsel %vm928_vm1, %v1701_v12, 0 }
 0x8aa   : > { %2434 = vmatpush3.bf16.xpose.msra.mxu0 %v1706_v13 }
 0x8ab   : > { %v1637_v14 = vadd.f32 %v1636_v5, %v2910_v53  ;;  %2445 = vmatprep.subr.bf16.mxu0 %v2584_v4 }
 0x8ac   : > { %v1699_v51 = vpop.permute.xlu1 %1698 }
 0x8ad   : > { %v1638_v44 = vsel %vm1120_vm11, %v1637_v14, -inf }
 0x8ae   : > { %1639 = vmax.xlane.f32.xlu0 %v1638_v44 }
 0x8b1   : > { %2436 = vmatmul.mubr.msk.bf16.vlgmr.msra.gmra.mrb[16].mxu0 %vm928_vm1, %v1699_v51 }
 0x8b2   : > { %2447 = vmatprep.mubr.msk.bf16.mxu0 %vm2585_vm0, %v2584_v4 }
 0x8c4   : > { %1650 = vrot.lane.b32.xlu0 %v2865_v62, %s2596_s15 }
 0x8c8   : > { %1777 = vrot.lane.b32.xlu0 %v2847_v56, %s2597_s21 }
 0x8cc   : > { %1839 = vrot.lane.b32.xlu0 %v2845_v55, %s2597_s21 }
 0x8d0   : > { %1837 = vrot.lane.b32.xlu0 %v2859_v60, %s2597_s21 }
 0x93b   : > { %v1640_v15 = vpop.xlane.xlu0 %1639 }
 0x93c   : > { %v1641_v16 = vsub.f32 %v1637_v14, %v1640_v15 }
 0x93e   : > { %v1642_v17 = vmul.f32 1.442695, %v1641_v16 }
 0x93f   : > { %v1651_v19 = vpop.permute.xlu0 %1650 }
 0x940   : > { %2564 = vpow2.f32 %v1642_v17  ;;  %v1656_v20 = vsel %vm1003_vm2, %v1651_v19, 0 }
 0x941   : > { %2428 = vmatpush3.bf16.msra.mxu1 %v1656_v20 }
 0x942   : > { %2439 = vmatprep.subr.bf16.mxu1 %v2584_v4 }
 0x943   : > { %v1778_v21 = vpop.permute.xlu0 %1777 }
 0x947   : > { %v1840_v22 = vpop.permute.xlu0 %1839 }
 0x948   : > { %v1849_v56 = vsel %vm928_vm1, %v1840_v22, 0  ;;  %v2548_v22 = vld [vmem:[%s3149_s11] sm:$0xff]  }
 0x949   : > { %2446 = vmatpush3.bf16.xpose.msra.mxu0 %v1849_v56  ;;  %v2549_v56 = vld [vmem:[%s3149_s11 + $0x8] sm:$0xff]  }
 0x94a   : > { %v2565_v23 = vpop.eup %2564  ;;  %2457 = vmatprep.subr.bf16.mxu0 %v2584_v4 }
 0x94b   : > { %v1644_v55 = vsel %vm1120_vm11, %v2565_v23, 0.0  ;;  %v1838_v60 = vpop.permute.xlu0 %1837 }
 0x94c   : > { %1645 = vadd.xlane.f32.xlu1 %v1644_v55  ;;  %v2552_v55 = vld [vmem:[%s3149_s11 + $0x20] sm:$0xff]  }
 0x950   : > { %2448 = vmatmul.mubr.msk.bf16.vlgmr.msra.gmra.mrb[20].mxu0 %vm928_vm1, %v1838_v60  ;;  %v2553_v60 = vld [vmem:[%s3149_s11 + $0x28] sm:$0xff]  }
 0x951   : > { %2473 = vmatprep.mubr.msk.bf16.mxu0 %vm2585_vm0, %v2584_v4  ;;  %2458 = vmatpush3.bf16.msra.mxu0 %v2548_v22 }
 0x952   : > { %2459 = vmatprep.subr.bf16.mxu0 %v2584_v4 }
 0x955   : > { %2460 = vmatpush3.bf16.msra.mxu0 %v2549_v56 }
 0x956   : > { %2461 = vmatprep.subr.bf16.mxu0 %v2584_v4 }
 0x95d   : > { %1779 = vrot.lane.b32.xlu1 %v2831_v50, %s2597_s21 }
 0x984   : > { %v1742_v24 = vpop.f32.mrb[16].mxu0 }
 0x985   : > { %1752 = vrot.lane.b32.xlu0 %v1742_v24, %s2590_s19  ;;  %1749 = vrot.lane.b32.xlu1 %v1742_v24, %s2588_s17  ;;  %v2437_v25 = vpop.f32.mrb[17].mxu0 }
 0x986   : > { %v1745_v26 = vpop.f32.mrb[18].mxu0  ;;  %v2555_v25 = vld [vmem:[%s3149_s11 + $0x38] sm:$0xff]  }
 0x987   : > { %v2438_v27 = vpop.f32.mrb[19].mxu0 }
 0x989   : > { %1758 = vrot.lane.b32.xlu0 %v1742_v24, %s2589_s18  ;;  %1755 = vrot.lane.b32.xlu1 %v1742_v24, %s2587_s16 }
 0x98d   : > { %1764 = vrot.lane.b32.xlu0 %v1742_v24, %s2591_s25  ;;  %1761 = vrot.lane.b32.xlu1 %v1742_v24, %s3157_s26  ;;  %s507_s26 = scalar_lea.vmem %s3152_s14, %s2722_s23 }
 0x991   : > { %1767 = vrot.lane.b32.xlu1 %v1742_v24, %s3158_s27 }
 0x9d9   : > { %v1646_v28 = vpop.xlane.xlu1 %1645 }
 0x9da   : > { %2566 = vrcp.f32 %v1646_v28 }
 0x9dd   : > { %v1780_v29 = vpop.permute.xlu1 %1779 }
 0x9de   : > { %v1785_v31 = vsel %vm928_vm1, %v1780_v29, 0 }
 0x9e4   : > { %v2567_v50 = vpop.eup %2566 }
 0x9e5   : > { %v1648_v30 = vmul.f32 %v2567_v50, %v2565_v23  ;;  %v2551_v23 = vld [vmem:[%s3149_s11 + $0x18] sm:$0xff]  }
 0x9e7   : > { %v1649_v32 = vpack.c.bf16 %v1648_v30, %v1648_v30 }
 0x9e9   : > { %2430 = vmatmul.mubr.msk.bf16.vlgmr.msra.gmra.mrb[40].mxu1 %vm1120_vm11, %v1649_v32 }
 0x9ea   : > { %2440 = vmatpush3.bf16.xpose.msra.mxu1 %v1785_v31  ;;  %2441 = vmatprep.mubr.msk.bf16.mxu1 %vm2585_vm0, %v2584_v4 }
 0x9eb   : > { %2451 = vmatprep.subr.bf16.mxu1 %v2584_v4 }
 0x9f1   : > { %2442 = vmatmul.mubr.msk.bf16.vlgmr.msra.gmra.mrb[44].mxu1 %vm928_vm1, %v1778_v21 }
 0x9f2   : > { %2453 = vmatprep.mubr.msk.bf16.mxu1 %vm2585_vm0, %v2584_v4 }
 0x9f7   : > { %v1750_v38 = vpop.permute.xlu1 %1749  ;;  %v1753_v39 = vpop.permute.xlu0 %1752 }
 0x9f8   : > { %v1770_v43 = vsel %vm997_vm3, %v1742_v24, %v1750_v38  ;;  %v2554_v24 = vld [vmem:[%s3149_s11 + $0x30] sm:$0xff]  }
 0x9f9   : > { %v1771_v49 = vsel %vm999_vm4, %v1770_v43, %v1753_v39 }
 0x9fb   : > { %v1756_v42 = vpop.permute.xlu1 %1755  ;;  %v1759_v47 = vpop.permute.xlu0 %1758 }
 0x9fc   : > { %v1772_v57 = vsel %vm1001_vm5, %v1771_v49, %v1756_v42 }
 0x9fd   : > { %v1773_v58 = vsel %vm1003_vm2, %v1772_v57, %v1759_v47  ;;  %v2258_v57 = vld [vmem:[%s3150_s12] ss:$0 sm:$0xff] }
 0x9ff   : > { %v1762_v52 = vpop.permute.xlu1 %1761  ;;  %v1765_v59 = vpop.permute.xlu0 %1764 }
 0xa00   : > { %v1774_v61 = vsel %vm1005_vm6, %v1773_v58, %v1762_v52 }
 0xa01   : > { %v1775_v7 = vsel %vm1007_vm7, %v1774_v61, %v1765_v59  ;;  %v2259_v59 = vld [vmem:[%s3151_s13] ss:$0 sm:$0xff] }
 0xa03   : > { %v1768_v0 = vpop.permute.xlu1 %1767 }
 0xa04   : > { %v1776_v8 = vsel %vm1009_vm8, %v1775_v7, %v1768_v0 }
 0xa23   : > { %v1885_v33 = vpop.f32.mrb[20].mxu0 }
 0xa24   : > { %v2449_v34 = vpop.f32.mrb[21].mxu0 }
 0xa25   : > { %v1888_v36 = vpop.f32.mrb[22].mxu0 }
 0xa26   : > { %v2450_v37 = vpop.f32.mrb[23].mxu0 }
 0xa27   : > { %v2574_v37 = vld [vmem:[%s2740_s20] sm:$0xff] }
 0xabc   : > { %v1692_v45 = vpop.f32.mrb[40].mxu1 }
 0xabd   : > { %v2431_v46 = vpop.f32.mrb[41].mxu1 }
 0xabe   : > { %v1695_v48 = vpop.f32.mrb[42].mxu1 }
 0xabf   : > { %v2432_v54 = vpop.f32.mrb[43].mxu1 }
 0xac4   : > { %v1821_v63 = vpop.f32.mrb[44].mxu1 }
 0xac5   : > { %v2443_v1 = vpop.f32.mrb[45].mxu1  ;;  %1829 = vperm.xlu0 %2504, %v1821_v63   ;;  %1833 = vperm.xlu1 %2505, %v1821_v63  }
 0xac6   : > { %v1824_v3 = vpop.f32.mrb[46].mxu1 }
 0xac7   : > { %v2444_v6 = vpop.f32.mrb[47].mxu1 }
 0xac9   : > { %1842 = vrot.lane.b32.xlu1 %v1776_v8, %s2594_s28  ;;  %2506 = vset.pattern.permute.xlu0 %v2583_v2 }
 0xb44   : > { %v1834_v9 = vpop.permute.xlu1 %1833  ;;  %v1830_v10 = vpop.permute.xlu0 %1829 }
 0xb45   : > { %v1836_v5 = vsel %vm920_vm10, %v1830_v10, %v1834_v9 }
 0xb48   : > { %v1843_v11 = vpop.permute.xlu1 %1842 }
 0xb49   : > { %v1886_v12 = vadd.f32 %v1885_v33, %v1843_v11 }
 0xb4b   : > { %v1891_v13 = vadd.f32 %v1886_v12, %v1836_v5 }
 0xb4d   : > { %v1892_v14 = vmul.f32 0.17677669, %v1891_v13 }
 0xb4f   : > { %v1893_v44 = vadd.f32 %v1892_v14, %v2910_v53 }
 0xb51   : > { %v1894_v51 = vsel %vm1120_vm11, %v1893_v44, -inf }
 0xb52   : > { %1895 = vmax.xlane.f32.xlu0 %v1894_v51 }
 0xb68   : > { %1906 = vrot.lane.b32.xlu0 %v2865_v62, %s2597_s21 }
 0xb6c   : > { %1959 = vrot.lane.b32.xlu0 %v1692_v45, %s2596_s15 }
 0xbdf   : > { %v1896_v2 = vpop.xlane.xlu0 %1895 }
 0xbe0   : > { %v1897_v15 = vsub.f32 %v1893_v44, %v1896_v2 }
 0xbe2   : > { %v1898_v16 = vmul.f32 1.442695, %v1897_v15 }
 0xbe3   : > { %v1907_v17 = vpop.permute.xlu0 %1906 }
 0xbe4   : > { %2568 = vpow2.f32 %v1898_v16  ;;  %v1912_v35 = vsel %vm1003_vm2, %v1907_v17, 0 }
 0xbe5   : > { %2452 = vmatpush3.bf16.msra.mxu1 %v1912_v35 }
 0xbe7   : > { %v1960_v31 = vpop.permute.xlu0 %1959 }
 0xbee   : > { %v2569_v41 = vpop.eup %2568 }
 0xbef   : > { %v1900_v19 = vsel %vm1120_vm11, %v2569_v41, 0.0 }
 0xbf0   : > { %1901 = vadd.xlane.f32.xlu1 %v1900_v19 }
 0xc01   : > { %1955 = vrot.lane.b32.xlu1 %v3010_v40, %s2597_s21  ;;  %v2550_v40 = vld [vmem:[%s3149_s11 + $0x10] sm:$0xff]  }
 0xc02   : > { %2462 = vmatpush3.bf16.msra.mxu0 %v2550_v40 }
 0xc03   : > { %2463 = vmatprep.subr.bf16.mxu0 %v2584_v4 }
 0xc06   : > { %2464 = vmatpush3.bf16.msra.mxu0 %v2551_v23 }
 0xc07   : > { %2465 = vmatprep.subr.bf16.mxu0 %v2584_v4 }
 0xc0a   : > { %2466 = vmatpush3.bf16.msra.mxu0 %v2552_v55 }
 0xc0b   : > { %2467 = vmatprep.subr.bf16.mxu0 %v2584_v4 }
 0xc0e   : > { %2468 = vmatpush3.bf16.msra.mxu0 %v2553_v60 }
 0xc0f   : > { %2469 = vmatprep.subr.bf16.mxu0 %v2584_v4 }
 0xc12   : > { %2470 = vmatpush3.bf16.msra.mxu0 %v2554_v24 }
 0xc13   : > { %2471 = vmatprep.subr.bf16.mxu0 %v2584_v4 }
 0xc16   : > { %2472 = vmatpush3.bf16.msra.mxu0 %v2555_v25 }
 0xc7d   : > { %v1902_v53 = vpop.xlane.xlu1 %1901 }
 0xc7e   : > { %2570 = vrcp.f32 %v1902_v53 }
 0xc81   : > { %v1956_v29 = vpop.permute.xlu1 %1955 }
 0xc82   : > { %v1966_v30 = vsel %vm928_vm1, %v2945_v18, %v1956_v29 }
 0xc83   : > { %v1968_v32 = vsel %vm1967_vm12, %v1966_v30, %v1960_v31 }
 0xc88   : > { %v2571_v62 = vpop.eup %2570 }
 0xc89   : > { %v1904_v20 = vmul.f32 %v2571_v62, %v2569_v41 }
 0xc8b   : > { %v1905_v21 = vpack.c.bf16 %v1904_v20, %v1904_v20 }
 0xc8d   : > { %2454 = vmatmul.mubr.msk.bf16.vlgmr.msra.gmra.mrb[48].mxu1 %vm1120_vm11, %v1905_v21 }
 0xd60   : > { %v1948_v26 = vpop.f32.mrb[48].mxu1 }
 0xd61   : > { %1963 = vrot.lane.b32.xlu1 %v1948_v26, %s2595_s30  ;;  %v2455_v27 = vpop.f32.mrb[49].mxu1 }
 0xd62   : > { %v1951_v28 = vpop.f32.mrb[50].mxu1 }
 0xd63   : > { %v2456_v50 = vpop.f32.mrb[51].mxu1 }
 0xdd3   : > { %v1964_v4 = vpop.permute.xlu1 %1963 }
 0xdd4   : > { %v1970_v33 = vsel %vm1969_vm13, %v1968_v32, %v1964_v4 }
 0xdd5   : > { %v1971_v34 = vpack.c.bf16 %v1970_v33, %v1970_v33 }
 0xdd7   : > { %2474 = vmatmul.mubr.bf16.vlgmr.msra.gmra.mrb[24].mxu0 %v1971_v34 }
 0xeaa   : > { %v2070_v36 = vpop.f32.mrb[24].mxu0 }
 0xeab   : > { %v2071_v38 = vadd.f32 %v2574_v37, %v2070_v36  ;;  %v2475_v39 = vpop.f32.mrb[25].mxu0 }
 0xeac   : > { %v2073_v42 = vpop.f32.mrb[26].mxu0 }
 0xead   : > { %2078 = vadd.xlane.f32.xlu0 %v2071_v38  ;;  %v2476_v43 = vpop.f32.mrb[27].mxu0 }
 0xf3a   : > { %v2079_v45 = vpop.xlane.xlu0 %2078 }
 0xf3b   : > { %v2081_v46 = vmul.f32 0.0078125, %v2079_v45 }
 0xf3d   : > { %v2082_v47 = vsub.f32 %v2071_v38, %v2081_v46 }
 0xf3f   : > { %v2083_v18 = vmul.f32 %v2082_v47, %v2082_v47 }
 0xf41   : > { %2084 = vadd.xlane.f32.xlu1 %v2083_v18 }
 0xfce   : > { %v2085_v48 = vpop.xlane.xlu1 %2084 }
 0xfcf   : > { %v2086_v49 = vmul.f32 0.0078125, %v2085_v48 }
 0xfd1   : > { %v2087_v52 = vadd.f32 1e-12, %v2086_v49 }
 0xfd3   : > { %2572 = vrsqrt.f32 %v2087_v52 }
 0xfdd   : > { %v2573_v54 = vpop.eup %2572 }
 0xfde   : > { %v2089_v58 = vmul.f32 %v2573_v54, %v2082_v47 }
 0xfe0   : > { %v2096_v61 = vmul.f32 %v2258_v57, %v2089_v58 }
 0xfe2   : > { %v2103_v63 = vadd.f32 %v2259_v59, %v2096_v61 }
 0xfe4   : > { %2104 = vst [vmem:[%s507_s26] sm:$0xff] %v2103_v63 }
 0xfe5 PF: > { %s24_s29 = sadd.s32 1, %s2581_s29  }
 0xfe6   : > { %p21_p4 = scmp.ge.s32.totalorder %s24_s29, 4  }
 0xfe8   :  { %23 = sbr.rel (!%p21_p4) target bundleno = 1 (0x1), region = 115 }

</bundles_post_ra>
